<compile_context>
chip_gen: v7x
topology: tpu7x:2x2x1
jax: 0.10.0
libtpu: 0.0.40
codegen_flags: <defaults>
</compile_context>

<pallas_src>
import math

import jax
import jax.numpy as jnp
from jax.experimental import pallas as pl
from jax.experimental.pallas import tpu as pltpu

HIDDEN = 256
LANE = 128


def _round_up(x, m):
    return ((x + m - 1) // m) * m


def _mlp_diffusion_kernel(xt_ref, t_ref, freq_ref,
                          w1_ref, b1_ref, w2_ref, b2_ref, w3_ref, b3_ref,
                          w4c_ref, w4s_ref, w4b_ref, b4_ref,
                          w5_ref, b5_ref, w6_ref, b6_ref,
                          out_ref):
    f32 = jnp.float32
    bf16 = jnp.bfloat16

    # ---- sinusoidal time embedding (cos half, sin half) — EUP work ----------
    t = t_ref[...]                          # (TB, 1) f32
    f = t * freq_ref[...]                   # (TB, 128) via broadcast
    cos_e = jnp.cos(f)
    sin_e = jnp.sin(f)

    # ---- base MLP: input_pad -> 256 -> 256 -> 256 (ReLU hiddens) ------------
    x = xt_ref[...].astype(bf16)
    h = jnp.dot(x, w1_ref[...], preferred_element_type=f32) + b1_ref[...]
    h = jnp.maximum(h, 0.0)
    h = jnp.dot(h.astype(bf16), w2_ref[...], preferred_element_type=f32) + b2_ref[...]
    h = jnp.maximum(h, 0.0)
    base = jnp.dot(h.astype(bf16), w3_ref[...], preferred_element_type=f32) + b3_ref[...]

    # ---- decoder: 512 -> 256 -> 256 -> output_pad ----------------------------
    # concat([cos, sin, base]) @ w4 rewritten as a split contraction (no (B,512) tensor).
    d = (jnp.dot(cos_e.astype(bf16), w4c_ref[...], preferred_element_type=f32)
         + jnp.dot(sin_e.astype(bf16), w4s_ref[...], preferred_element_type=f32)
         + jnp.dot(base.astype(bf16), w4b_ref[...], preferred_element_type=f32)
         + b4_ref[...])
    d = jnp.maximum(d, 0.0)
    d = jnp.dot(d.astype(bf16), w5_ref[...], preferred_element_type=f32) + b5_ref[...]
    d = jnp.maximum(d, 0.0)
    out_ref[...] = jnp.dot(d.astype(bf16), w6_ref[...], preferred_element_type=f32) + b6_ref[...]


def init_params(key, input_dim, output_dim, cond_dim=0):
    """Deterministic synthetic parameters (same shapes as the PyTorch module)."""
    dims = [
        (input_dim + cond_dim, HIDDEN),   # base w1
        (HIDDEN, HIDDEN),                 # base w2
        (HIDDEN, HIDDEN),                 # base w3 (output layer of base MLP)
        (2 * HIDDEN, HIDDEN),             # decoder w4
        (HIDDEN, HIDDEN),                 # decoder w5
        (HIDDEN, output_dim),             # decoder w6
    ]
    params = []
    for (fan_in, fan_out) in dims:
        key, kw, kb = jax.random.split(key, 3)
        bound = 1.0 / math.sqrt(fan_in)
        w = jax.random.uniform(kw, (fan_in, fan_out), jnp.float32, -bound, bound)
        b = jax.random.uniform(kb, (1, fan_out), jnp.float32, -bound, bound)
        params.extend([w, b])
    return params


def sinusoidal_freqs():
    half = HIDDEN // 2
    f = math.log(10000.0) / (half - 1)
    return jnp.exp(jnp.arange(half, dtype=jnp.float32) * -f)[None, :]   # (1, 128)


def mlp_diffusion_forward(xt, t, params, cond=None):
    """Pallas-backed forward pass of MLPDiffusion."""
    if cond is not None:
        xt = jnp.concatenate([xt, cond], axis=-1)
    xt = xt.astype(jnp.float32)
    t = jnp.reshape(t, (-1, 1)).astype(jnp.float32)   # t.view(-1, 1)

    w1, b1, w2, b2, w3, b3, w4, b4, w5, b5, w6, b6 = params
    B, in_dim = xt.shape
    out_dim = w6.shape[1]

    # --- lane-pad the ragged feature dims (zeros are exact no-ops) -----------
    in_pad = _round_up(in_dim, LANE)
    out_pad = _round_up(out_dim, LANE)
    xt_p = jnp.pad(xt, ((0, 0), (0, in_pad - in_dim)))
    w1_p = jnp.pad(w1, ((0, in_pad - in_dim), (0, 0)))
    w6_p = jnp.pad(w6, ((0, 0), (0, out_pad - out_dim)))
    b6_p = jnp.pad(b6, ((0, 0), (0, out_pad - out_dim)))

    # --- batch tiling: large tiles, padded to sublane/tile multiples ---------
    TB = 512
    if B < TB:
        TB = _round_up(max(B, 8), 8)
    B_pad = _round_up(B, TB)
    xt_p = jnp.pad(xt_p, ((0, B_pad - B), (0, 0)))
    t_p = jnp.pad(t, ((0, B_pad - B), (0, 0)))

    # split the 512-wide decoder input contraction: [cos | sin | base_emb]
    half = HIDDEN // 2
    w4c, w4s, w4b = w4[:half], w4[half:HIDDEN], w4[HIDDEN:]

    freqs = sinusoidal_freqs()

    bf16 = jnp.bfloat16
    weights = [
        w1_p.astype(bf16), b1,
        w2.astype(bf16), b2,
        w3.astype(bf16), b3,
        w4c.astype(bf16), w4s.astype(bf16), w4b.astype(bf16), b4,
        w5.astype(bf16), b5,
        w6_p.astype(bf16), b6_p,
    ]

    def batch_spec(feat):
        return pl.BlockSpec((TB, feat), lambda i: (i, 0))

    def const_spec(arr):
        return pl.BlockSpec(arr.shape, lambda i: (0, 0))

    in_specs = ([batch_spec(in_pad), batch_spec(1), const_spec(freqs)]
                + [const_spec(w) for w in weights])

    out = pl.pallas_call(
        _mlp_diffusion_kernel,
        out_shape=jax.ShapeDtypeStruct((B_pad, out_pad), jnp.float32),
        grid=(B_pad // TB,),
        in_specs=in_specs,
        out_specs=batch_spec(out_pad),
        compiler_params=pltpu.CompilerParams(
            dimension_semantics=("parallel",)),
    )(xt_p, t_p, freqs, *weights)

    return out[:B, :out_dim]


def _reference_forward(xt, t, params, cond=None):
    """Pure-JAX reference (bf16 MXU operands, f32 accumulation — same math as kernel)."""
    if cond is not None:
        xt = jnp.concatenate([xt, cond], axis=-1)
    xt = xt.astype(jnp.float32)
    t = jnp.reshape(t, (-1, 1)).astype(jnp.float32)
    f = t * sinusoidal_freqs()
    time_emb = jnp.concatenate([jnp.cos(f), jnp.sin(f)], axis=-1)
    w1, b1, w2, b2, w3, b3, w4, b4, w5, b5, w6, b6 = params

    bf = jnp.bfloat16

    def mm(a, w):
        return jnp.dot(a.astype(bf), w.astype(bf), preferred_element_type=jnp.float32)

    h = jnp.maximum(mm(xt, w1) + b1, 0.0)
    h = jnp.maximum(mm(h, w2) + b2, 0.0)
    base_emb = mm(h, w3) + b3
    emb = jnp.concatenate([time_emb, base_emb], axis=-1)
    d = jnp.maximum(mm(emb, w4) + b4, 0.0)
    d = jnp.maximum(mm(d, w5) + b5, 0.0)
    return mm(d, w6) + b6


if __name__ == "__main__":
    key = jax.random.PRNGKey(0)
    input_dim, output_dim, batch = 4, 4, 2

    k_params, k_x, k_t = jax.random.split(key, 3)
    params = init_params(k_params, input_dim, output_dim)
    xt = jax.random.normal(k_x, (batch, input_dim), jnp.float32)
    t = jax.random.uniform(k_t, (batch,), jnp.float32, 0.0, 1000.0)

    out = mlp_diffusion_forward(xt, t, params)
    out = jax.block_until_ready(out)
    ref = _reference_forward(xt, t, params)
    assert out.shape == (batch, output_dim)
    assert jnp.allclose(out, ref, atol=2e-2, rtol=2e-2), "mismatch vs pure-JAX reference"

    # Second check: batch large enough to exercise a multi-step grid (pipelined tiles).
    batch2 = 1040
    k_x2, k_t2 = jax.random.split(k_x)
    xt2 = jax.random.normal(k_x2, (batch2, input_dim), jnp.float32)
    t2 = jax.random.uniform(k_t2, (batch2,), jnp.float32, 0.0, 1000.0)
    out2 = jax.block_until_ready(mlp_diffusion_forward(xt2, t2, params))
    ref2 = _reference_forward(xt2, t2, params)
    assert out2.shape == (batch2, output_dim)
    assert jnp.allclose(out2, ref2, atol=2e-2, rtol=2e-2), "mismatch vs pure-JAX reference (tiled)"

    print("KERNEL_OK")
</pallas_src>

<mosaic_0001>
module attributes {stable_mosaic.version = 11 : i64} {
  func.func @_mlp_diffusion_kernel(%arg0: i32, %arg1: memref<8x128xf32, #tpu.memory_space<vmem>>, %arg2: memref<8x1xf32, #tpu.memory_space<vmem>>, %arg3: memref<1x128xf32, #tpu.memory_space<vmem>>, %arg4: memref<128x256xbf16, #tpu.memory_space<vmem>>, %arg5: memref<1x256xf32, #tpu.memory_space<vmem>>, %arg6: memref<256x256xbf16, #tpu.memory_space<vmem>>, %arg7: memref<1x256xf32, #tpu.memory_space<vmem>>, %arg8: memref<256x256xbf16, #tpu.memory_space<vmem>>, %arg9: memref<1x256xf32, #tpu.memory_space<vmem>>, %arg10: memref<128x256xbf16, #tpu.memory_space<vmem>>, %arg11: memref<128x256xbf16, #tpu.memory_space<vmem>>, %arg12: memref<256x256xbf16, #tpu.memory_space<vmem>>, %arg13: memref<1x256xf32, #tpu.memory_space<vmem>>, %arg14: memref<256x256xbf16, #tpu.memory_space<vmem>>, %arg15: memref<1x256xf32, #tpu.memory_space<vmem>>, %arg16: memref<256x128xbf16, #tpu.memory_space<vmem>>, %arg17: memref<1x128xf32, #tpu.memory_space<vmem>>, %arg18: memref<8x128xf32, #tpu.memory_space<vmem>>) attributes {dimension_semantics = [#tpu.dimension_semantics<parallel>], iteration_bounds = array<i64: 1>, scalar_prefetch = 0 : i64, scratch_operands = 0 : i64, tpu.core_type = #tpu.core_type<tc>, window_params = [{transform_indices = @transform_0, window_bounds = array<i64: 8, 128>}, {transform_indices = @transform_1, window_bounds = array<i64: 8, 1>}, {pipeline_mode = #tpu.pipeline_mode<synchronous>, transform_indices = @transform_2, window_bounds = array<i64: 1, 128>}, {pipeline_mode = #tpu.pipeline_mode<synchronous>, transform_indices = @transform_3, window_bounds = array<i64: 128, 256>}, {pipeline_mode = #tpu.pipeline_mode<synchronous>, transform_indices = @transform_4, window_bounds = array<i64: 1, 256>}, {pipeline_mode = #tpu.pipeline_mode<synchronous>, transform_indices = @transform_5, window_bounds = array<i64: 256, 256>}, {pipeline_mode = #tpu.pipeline_mode<synchronous>, transform_indices = @transform_6, window_bounds = array<i64: 1, 256>}, {pipeline_mode = #tpu.pipeline_mode<synchronous>, transform_indices = @transform_7, window_bounds = array<i64: 256, 256>}, {pipeline_mode = #tpu.pipeline_mode<synchronous>, transform_indices = @transform_8, window_bounds = array<i64: 1, 256>}, {pipeline_mode = #tpu.pipeline_mode<synchronous>, transform_indices = @transform_9, window_bounds = array<i64: 128, 256>}, {pipeline_mode = #tpu.pipeline_mode<synchronous>, transform_indices = @transform_10, window_bounds = array<i64: 128, 256>}, {pipeline_mode = #tpu.pipeline_mode<synchronous>, transform_indices = @transform_11, window_bounds = array<i64: 256, 256>}, {pipeline_mode = #tpu.pipeline_mode<synchronous>, transform_indices = @transform_12, window_bounds = array<i64: 1, 256>}, {pipeline_mode = #tpu.pipeline_mode<synchronous>, transform_indices = @transform_13, window_bounds = array<i64: 256, 256>}, {pipeline_mode = #tpu.pipeline_mode<synchronous>, transform_indices = @transform_14, window_bounds = array<i64: 1, 256>}, {pipeline_mode = #tpu.pipeline_mode<synchronous>, transform_indices = @transform_15, window_bounds = array<i64: 256, 128>}, {pipeline_mode = #tpu.pipeline_mode<synchronous>, transform_indices = @transform_16, window_bounds = array<i64: 1, 128>}, {transform_indices = @transform_17, window_bounds = array<i64: 8, 128>}]} {
    %c0 = arith.constant 0 : index
    %c0_0 = arith.constant 0 : index
    %0 = vector.load %arg2[%c0, %c0_0] : memref<8x1xf32, #tpu.memory_space<vmem>>, vector<8x1xf32>
    %c0_1 = arith.constant 0 : index
    %c0_2 = arith.constant 0 : index
    %1 = vector.load %arg3[%c0_1, %c0_2] : memref<1x128xf32, #tpu.memory_space<vmem>>, vector<1x128xf32>
    %2 = vector.broadcast %0 : vector<8x1xf32> to vector<8x128xf32>
    %3 = vector.broadcast %1 : vector<1x128xf32> to vector<8x128xf32>
    %4 = arith.mulf %2, %3 : vector<8x128xf32>
    %5 = math.cos %4 : vector<8x128xf32>
    %6 = math.sin %4 : vector<8x128xf32>
    %c0_3 = arith.constant 0 : index
    %c0_4 = arith.constant 0 : index
    %7 = vector.load %arg1[%c0_3, %c0_4] : memref<8x128xf32, #tpu.memory_space<vmem>>, vector<8x128xf32>
    %8 = arith.truncf %7 : vector<8x128xf32> to vector<8x128xbf16>
    %c0_5 = arith.constant 0 : index
    %c0_6 = arith.constant 0 : index
    %9 = vector.load %arg4[%c0_5, %c0_6] : memref<128x256xbf16, #tpu.memory_space<vmem>>, vector<128x256xbf16>
    %cst = arith.constant dense<0.000000e+00> : vector<8x256xf32>
    %10 = tpu.matmul %8, %9, %cst {dimension_numbers = #tpu.dot_dimension_numbers<[1], [0], [0], [1], [0, 0, 1, 1], [], []>} : vector<8x128xbf16>, vector<128x256xbf16>, vector<8x256xf32> -> vector<8x256xf32>
    %c0_7 = arith.constant 0 : index
    %c0_8 = arith.constant 0 : index
    %11 = vector.load %arg5[%c0_7, %c0_8] : memref<1x256xf32, #tpu.memory_space<vmem>>, vector<1x256xf32>
    %12 = vector.broadcast %11 : vector<1x256xf32> to vector<8x256xf32>
    %13 = arith.addf %10, %12 : vector<8x256xf32>
    %cst_9 = arith.constant 0.000000e+00 : f32
    %14 = vector.broadcast %cst_9 : f32 to vector<8x256xf32>
    %15 = arith.maximumf %13, %14 : vector<8x256xf32>
    %16 = arith.truncf %15 : vector<8x256xf32> to vector<8x256xbf16>
    %c0_10 = arith.constant 0 : index
    %c0_11 = arith.constant 0 : index
    %17 = vector.load %arg6[%c0_10, %c0_11] : memref<256x256xbf16, #tpu.memory_space<vmem>>, vector<256x256xbf16>
    %cst_12 = arith.constant dense<0.000000e+00> : vector<8x256xf32>
    %18 = tpu.matmul %16, %17, %cst_12 {dimension_numbers = #tpu.dot_dimension_numbers<[1], [0], [0], [1], [0, 0, 1, 1], [], []>} : vector<8x256xbf16>, vector<256x256xbf16>, vector<8x256xf32> -> vector<8x256xf32>
    %c0_13 = arith.constant 0 : index
    %c0_14 = arith.constant 0 : index
    %19 = vector.load %arg7[%c0_13, %c0_14] : memref<1x256xf32, #tpu.memory_space<vmem>>, vector<1x256xf32>
    %20 = vector.broadcast %19 : vector<1x256xf32> to vector<8x256xf32>
    %21 = arith.addf %18, %20 : vector<8x256xf32>
    %cst_15 = arith.constant 0.000000e+00 : f32
    %22 = vector.broadcast %cst_15 : f32 to vector<8x256xf32>
    %23 = arith.maximumf %21, %22 : vector<8x256xf32>
    %24 = arith.truncf %23 : vector<8x256xf32> to vector<8x256xbf16>
    %c0_16 = arith.constant 0 : index
    %c0_17 = arith.constant 0 : index
    %25 = vector.load %arg8[%c0_16, %c0_17] : memref<256x256xbf16, #tpu.memory_space<vmem>>, vector<256x256xbf16>
    %cst_18 = arith.constant dense<0.000000e+00> : vector<8x256xf32>
    %26 = tpu.matmul %24, %25, %cst_18 {dimension_numbers = #tpu.dot_dimension_numbers<[1], [0], [0], [1], [0, 0, 1, 1], [], []>} : vector<8x256xbf16>, vector<256x256xbf16>, vector<8x256xf32> -> vector<8x256xf32>
    %c0_19 = arith.constant 0 : index
    %c0_20 = arith.constant 0 : index
    %27 = vector.load %arg9[%c0_19, %c0_20] : memref<1x256xf32, #tpu.memory_space<vmem>>, vector<1x256xf32>
    %28 = vector.broadcast %27 : vector<1x256xf32> to vector<8x256xf32>
    %29 = arith.addf %26, %28 : vector<8x256xf32>
    %30 = arith.truncf %5 : vector<8x128xf32> to vector<8x128xbf16>
    %c0_21 = arith.constant 0 : index
    %c0_22 = arith.constant 0 : index
    %31 = vector.load %arg10[%c0_21, %c0_22] : memref<128x256xbf16, #tpu.memory_space<vmem>>, vector<128x256xbf16>
    %cst_23 = arith.constant dense<0.000000e+00> : vector<8x256xf32>
    %32 = tpu.matmul %30, %31, %cst_23 {dimension_numbers = #tpu.dot_dimension_numbers<[1], [0], [0], [1], [0, 0, 1, 1], [], []>} : vector<8x128xbf16>, vector<128x256xbf16>, vector<8x256xf32> -> vector<8x256xf32>
    %33 = arith.truncf %6 : vector<8x128xf32> to vector<8x128xbf16>
    %c0_24 = arith.constant 0 : index
    %c0_25 = arith.constant 0 : index
    %34 = vector.load %arg11[%c0_24, %c0_25] : memref<128x256xbf16, #tpu.memory_space<vmem>>, vector<128x256xbf16>
    %cst_26 = arith.constant dense<0.000000e+00> : vector<8x256xf32>
    %35 = tpu.matmul %33, %34, %cst_26 {dimension_numbers = #tpu.dot_dimension_numbers<[1], [0], [0], [1], [0, 0, 1, 1], [], []>} : vector<8x128xbf16>, vector<128x256xbf16>, vector<8x256xf32> -> vector<8x256xf32>
    %36 = arith.addf %32, %35 : vector<8x256xf32>
    %37 = arith.truncf %29 : vector<8x256xf32> to vector<8x256xbf16>
    %c0_27 = arith.constant 0 : index
    %c0_28 = arith.constant 0 : index
    %38 = vector.load %arg12[%c0_27, %c0_28] : memref<256x256xbf16, #tpu.memory_space<vmem>>, vector<256x256xbf16>
    %cst_29 = arith.constant dense<0.000000e+00> : vector<8x256xf32>
    %39 = tpu.matmul %37, %38, %cst_29 {dimension_numbers = #tpu.dot_dimension_numbers<[1], [0], [0], [1], [0, 0, 1, 1], [], []>} : vector<8x256xbf16>, vector<256x256xbf16>, vector<8x256xf32> -> vector<8x256xf32>
    %40 = arith.addf %36, %39 : vector<8x256xf32>
    %c0_30 = arith.constant 0 : index
    %c0_31 = arith.constant 0 : index
    %41 = vector.load %arg13[%c0_30, %c0_31] : memref<1x256xf32, #tpu.memory_space<vmem>>, vector<1x256xf32>
    %42 = vector.broadcast %41 : vector<1x256xf32> to vector<8x256xf32>
    %43 = arith.addf %40, %42 : vector<8x256xf32>
    %cst_32 = arith.constant 0.000000e+00 : f32
    %44 = vector.broadcast %cst_32 : f32 to vector<8x256xf32>
    %45 = arith.maximumf %43, %44 : vector<8x256xf32>
    %46 = arith.truncf %45 : vector<8x256xf32> to vector<8x256xbf16>
    %c0_33 = arith.constant 0 : index
    %c0_34 = arith.constant 0 : index
    %47 = vector.load %arg14[%c0_33, %c0_34] : memref<256x256xbf16, #tpu.memory_space<vmem>>, vector<256x256xbf16>
    %cst_35 = arith.constant dense<0.000000e+00> : vector<8x256xf32>
    %48 = tpu.matmul %46, %47, %cst_35 {dimension_numbers = #tpu.dot_dimension_numbers<[1], [0], [0], [1], [0, 0, 1, 1], [], []>} : vector<8x256xbf16>, vector<256x256xbf16>, vector<8x256xf32> -> vector<8x256xf32>
    %c0_36 = arith.constant 0 : index
    %c0_37 = arith.constant 0 : index
    %49 = vector.load %arg15[%c0_36, %c0_37] : memref<1x256xf32, #tpu.memory_space<vmem>>, vector<1x256xf32>
    %50 = vector.broadcast %49 : vector<1x256xf32> to vector<8x256xf32>
    %51 = arith.addf %48, %50 : vector<8x256xf32>
    %cst_38 = arith.constant 0.000000e+00 : f32
    %52 = vector.broadcast %cst_38 : f32 to vector<8x256xf32>
    %53 = arith.maximumf %51, %52 : vector<8x256xf32>
    %54 = arith.truncf %53 : vector<8x256xf32> to vector<8x256xbf16>
    %c0_39 = arith.constant 0 : index
    %c0_40 = arith.constant 0 : index
    %55 = vector.load %arg16[%c0_39, %c0_40] : memref<256x128xbf16, #tpu.memory_space<vmem>>, vector<256x128xbf16>
    %cst_41 = arith.constant dense<0.000000e+00> : vector<8x128xf32>
    %56 = tpu.matmul %54, %55, %cst_41 {dimension_numbers = #tpu.dot_dimension_numbers<[1], [0], [0], [1], [0, 0, 1, 1], [], []>} : vector<8x256xbf16>, vector<256x128xbf16>, vector<8x128xf32> -> vector<8x128xf32>
    %c0_42 = arith.constant 0 : index
    %c0_43 = arith.constant 0 : index
    %57 = vector.load %arg17[%c0_42, %c0_43] : memref<1x128xf32, #tpu.memory_space<vmem>>, vector<1x128xf32>
    %58 = vector.broadcast %57 : vector<1x128xf32> to vector<8x128xf32>
    %59 = arith.addf %56, %58 : vector<8x128xf32>
    %c0_44 = arith.constant 0 : index
    %c0_45 = arith.constant 0 : index
    %60 = vector.load %arg18[%c0_44, %c0_45] : memref<8x128xf32, #tpu.memory_space<vmem>>, vector<8x128xf32>
    tpu.vector_store %arg18[%c0_44, %c0_45], %59 {strides = array<i32>} : memref<8x128xf32, #tpu.memory_space<vmem>>, vector<8x128xf32>,
    return
  }
  func.func @transform_0(%arg0: i32) -> (i32, i32) {
    %c0_i32 = arith.constant 0 : i32
    %c0_i32_0 = arith.constant 0 : i32
    return %arg0, %c0_i32 : i32, i32
  }
  func.func @transform_1(%arg0: i32) -> (i32, i32) {
    %c0_i32 = arith.constant 0 : i32
    %c0_i32_0 = arith.constant 0 : i32
    return %arg0, %c0_i32 : i32, i32
  }
  func.func @transform_2(%arg0: i32) -> (i32, i32) {
    %c0_i32 = arith.constant 0 : i32
    %c0_i32_0 = arith.constant 0 : i32
    %c0_i32_1 = arith.constant 0 : i32
    return %c0_i32, %c0_i32_0 : i32, i32
  }
  func.func @transform_3(%arg0: i32) -> (i32, i32) {
    %c0_i32 = arith.constant 0 : i32
    %c0_i32_0 = arith.constant 0 : i32
    %c0_i32_1 = arith.constant 0 : i32
    return %c0_i32, %c0_i32_0 : i32, i32
  }
  func.func @transform_4(%arg0: i32) -> (i32, i32) {
    %c0_i32 = arith.constant 0 : i32
    %c0_i32_0 = arith.constant 0 : i32
    %c0_i32_1 = arith.constant 0 : i32
    return %c0_i32, %c0_i32_0 : i32, i32
  }
  func.func @transform_5(%arg0: i32) -> (i32, i32) {
    %c0_i32 = arith.constant 0 : i32
    %c0_i32_0 = arith.constant 0 : i32
    %c0_i32_1 = arith.constant 0 : i32
    return %c0_i32, %c0_i32_0 : i32, i32
  }
  func.func @transform_6(%arg0: i32) -> (i32, i32) {
    %c0_i32 = arith.constant 0 : i32
    %c0_i32_0 = arith.constant 0 : i32
    %c0_i32_1 = arith.constant 0 : i32
    return %c0_i32, %c0_i32_0 : i32, i32
  }
  func.func @transform_7(%arg0: i32) -> (i32, i32) {
    %c0_i32 = arith.constant 0 : i32
    %c0_i32_0 = arith.constant 0 : i32
    %c0_i32_1 = arith.constant 0 : i32
    return %c0_i32, %c0_i32_0 : i32, i32
  }
  func.func @transform_8(%arg0: i32) -> (i32, i32) {
    %c0_i32 = arith.constant 0 : i32
    %c0_i32_0 = arith.constant 0 : i32
    %c0_i32_1 = arith.constant 0 : i32
    return %c0_i32, %c0_i32_0 : i32, i32
  }
  func.func @transform_9(%arg0: i32) -> (i32, i32) {
    %c0_i32 = arith.constant 0 : i32
    %c0_i32_0 = arith.constant 0 : i32
    %c0_i32_1 = arith.constant 0 : i32
    return %c0_i32, %c0_i32_0 : i32, i32
  }
  func.func @transform_10(%arg0: i32) -> (i32, i32) {
    %c0_i32 = arith.constant 0 : i32
    %c0_i32_0 = arith.constant 0 : i32
    %c0_i32_1 = arith.constant 0 : i32
    return %c0_i32, %c0_i32_0 : i32, i32
  }
  func.func @transform_11(%arg0: i32) -> (i32, i32) {
    %c0_i32 = arith.constant 0 : i32
    %c0_i32_0 = arith.constant 0 : i32
    %c0_i32_1 = arith.constant 0 : i32
    return %c0_i32, %c0_i32_0 : i32, i32
  }
  func.func @transform_12(%arg0: i32) -> (i32, i32) {
    %c0_i32 = arith.constant 0 : i32
    %c0_i32_0 = arith.constant 0 : i32
    %c0_i32_1 = arith.constant 0 : i32
    return %c0_i32, %c0_i32_0 : i32, i32
  }
  func.func @transform_13(%arg0: i32) -> (i32, i32) {
    %c0_i32 = arith.constant 0 : i32
    %c0_i32_0 = arith.constant 0 : i32
    %c0_i32_1 = arith.constant 0 : i32
    return %c0_i32, %c0_i32_0 : i32, i32
  }
  func.func @transform_14(%arg0: i32) -> (i32, i32) {
    %c0_i32 = arith.constant 0 : i32
    %c0_i32_0 = arith.constant 0 : i32
    %c0_i32_1 = arith.constant 0 : i32
    return %c0_i32, %c0_i32_0 : i32, i32
  }
  func.func @transform_15(%arg0: i32) -> (i32, i32) {
    %c0_i32 = arith.constant 0 : i32
    %c0_i32_0 = arith.constant 0 : i32
    %c0_i32_1 = arith.constant 0 : i32
    return %c0_i32, %c0_i32_0 : i32, i32
  }
  func.func @transform_16(%arg0: i32) -> (i32, i32) {
    %c0_i32 = arith.constant 0 : i32
    %c0_i32_0 = arith.constant 0 : i32
    %c0_i32_1 = arith.constant 0 : i32
    return %c0_i32, %c0_i32_0 : i32, i32
  }
  func.func @transform_17(%arg0: i32) -> (i32, i32) {
    %c0_i32 = arith.constant 0 : i32
    %c0_i32_0 = arith.constant 0 : i32
    return %arg0, %c0_i32 : i32, i32
  }
}

</mosaic_0001>

<bundles_post_ra>
// kernel: tpu_custom_call.1
= control target key start
LH: loop header
LB: loop body
LE: loop exit
PB: predicated region body
PF: predicated region fallthrough
CT: control target
= control target key end

     0   :  { %s3135_s0 = inlined_call_operand.vmem [shape: f32[8,128], index: 0, kind: input, shape index: {}]   ;;  %s3136_s1 = inlined_call_operand.vmem [shape: f32[8,1], index: 1, kind: input, shape index: {}]   ;;  %s3137_s2 = inlined_call_operand.hbm [shape: f32[1,128], index: 2, kind: input, shape index: {}]   ;;  %s3138_s3 = inlined_call_operand.hbm [shape: bf16[128,256], index: 3, kind: input, shape index: {}]   ;;  %s3139_s4 = inlined_call_operand.vmem [shape: f32[1,256], index: 4, kind: input, shape index: {}]   ;;  %s3140_s5 = inlined_call_operand.hbm [shape: bf16[256,256], index: 5, kind: input, shape index: {}]   ;;  %s3141_s6 = inlined_call_operand.vmem [shape: f32[1,256], index: 6, kind: input, shape index: {}]   ;;  %s3142_s7 = inlined_call_operand.hbm [shape: bf16[256,256], index: 7, kind: input, shape index: {}]   ;;  %s3143_s8 = inlined_call_operand.vmem [shape: f32[1,256], index: 8, kind: input, shape index: {}]   ;;  %s3144_s9 = inlined_call_operand.hbm [shape: bf16[128,256], index: 9, kind: input, shape index: {}]   ;;  %s3145_s10 = inlined_call_operand.hbm [shape: bf16[128,256], index: 10, kind: input, shape index: {}]   ;;  %s3146_s11 = inlined_call_operand.hbm [shape: bf16[256,256], index: 11, kind: input, shape index: {}]   ;;  %s3147_s12 = inlined_call_operand.vmem [shape: f32[1,256], index: 12, kind: input, shape index: {}]   ;;  %s3148_s13 = inlined_call_operand.hbm [shape: bf16[256,256], index: 13, kind: input, shape index: {}]   ;;  %s3149_s14 = inlined_call_operand.vmem [shape: f32[1,256], index: 14, kind: input, shape index: {}]   ;;  %s3150_s15 = inlined_call_operand.hbm [shape: bf16[256,128], index: 15, kind: input, shape index: {}]   ;;  %s3151_s16 = inlined_call_operand.vmem [shape: f32[1,128], index: 16, kind: input, shape index: {}]   ;;  %s3152_s17 = inlined_call_operand.hbm [shape: f32[8,128], index: 17, kind: output, shape index: {}]  }
   0x1   :  { %3154 = sst [smem:[#allocation24_spill]] %s3135_s0 }
   0x2   :  { %3155 = sst [smem:[#allocation25_spill]] %s3136_s1 }
   0x3   :  { %3156 = sst [smem:[#allocation26_spill]] %s3152_s17 }
   0x4   :  { %22 = vsyncpa [#allocation3], 0 }
   0x5   :  { %23 = vsyncpa [#allocation6], 0 }
   0x6   :  { %24 = vsyncpa [#allocation9], 0 }
   0x7   :  { %25 = vsyncpa [#allocation12], 0 }
   0x8   :  { %26 = vsyncpa [#allocation15], 0 }
   0x9   :  { %27 = vsyncpa [#allocation4], 0  ;;  %s2789_s24 = smov [#allocation5]   ;;  %s2557_s28 = scalar_lea.hbm %s3138_s3, 2048 }
   0xa   :  { %s47_s25 = sshll.u32 %s2789_s24, 4  ;;  %p2558_p0 = scmp.ne.s32.totalorder %s3138_s3, %s2557_s28  ;;  %s48_s25 = int_to_ptr.vmem [resolvable:$true] %s47_s25 }
   0xb   :  { %p2561_p1 = scmp.lt.u32.totalorder %s2557_s28, %s3138_s3 }
   0xd   :  { %p2563_p2 = pnand %p2561_p1, %p2558_p0 }
   0xf   :  { %2566 = shalt.err (!%p2563_p2)
}
  0x10   :  { %s2567_s19 = scalar_lea.vmem %s48_s25, 2048  ;;  %p2572_p4 = scmp.lt.s32.totalorder %s48_s25, %s48_s25 }
  0x11   :  { %p2568_p3 = scmp.ne.s32.totalorder %s48_s25, %s2567_s19  ;;  %p2573_p5 = scmp.lt.s32.totalorder %s2567_s19, %s2567_s19 }
  0x13   :  { %p2574_p6 = por %p2573_p5, %p2572_p4 }
  0x15   :  { %p2575_p7 = pnand %p2574_p6, %p2568_p3 }
  0x17   :  { %2578 = shalt.err (!%p2575_p7)
}
  0x18   :  { %s2790_s1 = smov 128   ;;  %s2791_s20 = smov 8  }
  0x19   :  { %53 = dma.hbm_to_vmem [thread:$0]  %s3138_s3, 2048, %s48_s25, [#allocation6], %s2790_s1, %s2790_s1, %s2791_s20  }
  0x1a   :  { %s2792_s23 = smov [#allocation8]   ;;  %s2793_s26 = smov [#allocation11]  }
  0x1b   :  { %s75_s24 = sshll.u32 %s2792_s23, 4  ;;  %s101_s27 = sshll.u32 %s2793_s26, 4  ;;  %s76_s24 = int_to_ptr.vmem [resolvable:$true] %s75_s24  ;;  %s102_s27 = int_to_ptr.vmem [resolvable:$true] %s101_s27 }
  0x1c   :  { %s2579_s0 = scalar_lea.hbm %s3142_s7, 4096 }
  0x1d   :  { %p2580_p8 = scmp.ne.s32.totalorder %s3142_s7, %s2579_s0  ;;  %p2583_p9 = scmp.lt.u32.totalorder %s2579_s0, %s3142_s7 }
  0x1f   :  { %p2585_p10 = pnand %p2583_p9, %p2580_p8 }
  0x21   :  { %2588 = shalt.err (!%p2585_p10)
}
  0x22   :  { %s2589_s3 = scalar_lea.vmem %s76_s24, 4096  ;;  %p2594_p12 = scmp.lt.s32.totalorder %s76_s24, %s76_s24 }
  0x23   :  { %p2590_p11 = scmp.ne.s32.totalorder %s76_s24, %s2589_s3  ;;  %p2595_p13 = scmp.lt.s32.totalorder %s2589_s3, %s2589_s3 }
  0x25   :  { %p2596_p0 = por %p2595_p13, %p2594_p12 }
  0x27   :  { %p2597_p1 = pnand %p2596_p0, %p2590_p11 }
  0x29   :  { %2600 = shalt.err (!%p2597_p1)
}
  0x2a   :  { %81 = dma.hbm_to_vmem [thread:$0]  %s3142_s7, 4096, %s76_s24, [#allocation9], %s2790_s1, %s2790_s1, %s2791_s20  }
  0x2b   :  { %s2601_s23 = scalar_lea.hbm %s3145_s10, 2048 }
  0x2c   :  { %p2602_p2 = scmp.ne.s32.totalorder %s3145_s10, %s2601_s23  ;;  %p2605_p3 = scmp.lt.u32.totalorder %s2601_s23, %s3145_s10 }
  0x2e   :  { %p2607_p4 = pnand %p2605_p3, %p2602_p2 }
  0x30   :  { %2610 = shalt.err (!%p2607_p4)
}
  0x31   :  { %s2611_s30 = scalar_lea.vmem %s102_s27, 2048  ;;  %p2616_p6 = scmp.lt.s32.totalorder %s102_s27, %s102_s27 }
  0x32   :  { %p2612_p5 = scmp.ne.s32.totalorder %s102_s27, %s2611_s30  ;;  %p2617_p7 = scmp.lt.s32.totalorder %s2611_s30, %s2611_s30 }
  0x34   :  { %p2618_p8 = por %p2617_p7, %p2616_p6 }
  0x36   :  { %p2619_p9 = pnand %p2618_p8, %p2612_p5 }
  0x38   :  { %2622 = shalt.err (!%p2619_p9)
}
  0x39   :  { %107 = dma.hbm_to_vmem [thread:$0]  %s3145_s10, 2048, %s102_s27, [#allocation12], %s2790_s1, %s2790_s1, %s2791_s20  }
  0x3a   :  { %s2794_s18 = smov [#allocation14]   ;;  %s2795_s3 = smov [#allocation2]  }
  0x3b   :  { %s127_s19 = sshll.u32 %s2794_s18, 4  ;;  %s38_s25 = sshll.u32 %s2795_s3, 4  ;;  %s128_s19 = int_to_ptr.vmem [resolvable:$true] %s127_s19  ;;  %s39_s25 = int_to_ptr.vmem [resolvable:$true] %s38_s25 }
  0x3c   :  { %s2623_s17 = scalar_lea.hbm %s3148_s13, 4096 }
  0x3d   :  { %p2624_p10 = scmp.ne.s32.totalorder %s3148_s13, %s2623_s17  ;;  %p2627_p11 = scmp.lt.u32.totalorder %s2623_s17, %s3148_s13 }
  0x3f   :  { %p2629_p12 = pnand %p2627_p11, %p2624_p10 }
  0x41   :  { %2632 = shalt.err (!%p2629_p12)
}
  0x42   :  { %s2633_s10 = scalar_lea.vmem %s128_s19, 4096  ;;  %p2638_p0 = scmp.lt.s32.totalorder %s128_s19, %s128_s19 }
  0x43   :  { %p2634_p13 = scmp.ne.s32.totalorder %s128_s19, %s2633_s10  ;;  %p2639_p1 = scmp.lt.s32.totalorder %s2633_s10, %s2633_s10 }
  0x45   :  { %p2640_p2 = por %p2639_p1, %p2638_p0 }
  0x47   :  { %p2641_p3 = pnand %p2640_p2, %p2634_p13 }
  0x49   :  { %2644 = shalt.err (!%p2641_p3)
}
  0x4a   :  { %133 = dma.hbm_to_vmem [thread:$0]  %s3148_s13, 4096, %s128_s19, [#allocation15], %s2790_s1, %s2790_s1, %s2791_s20  }
  0x4b   :  { %s2645_s24 = scalar_lea.hbm %s3137_s2, 16 }
  0x4c   :  { %p2646_p4 = scmp.ne.s32.totalorder %s3137_s2, %s2645_s24  ;;  %p2649_p5 = scmp.lt.u32.totalorder %s2645_s24, %s3137_s2 }
  0x4e   :  { %p2651_p6 = pnand %p2649_p5, %p2646_p4 }
  0x50   :  { %2654 = shalt.err (!%p2651_p6)
}
  0x51   :  { %s2655_s17 = scalar_lea.vmem %s39_s25, 16  ;;  %s2659_s23 = scalar_lea.vmem %s39_s25, 32 }
  0x52   :  { %p2656_p7 = scmp.ne.s32.totalorder %s39_s25, %s2655_s17  ;;  %p2660_p8 = scmp.lt.s32.totalorder %s39_s25, %s39_s25 }
  0x53   :  { %p2661_p9 = scmp.lt.s32.totalorder %s2659_s23, %s2655_s17 }
  0x55   :  { %p2662_p10 = por %p2661_p9, %p2660_p8 }
  0x57   :  { %p2663_p11 = pnand %p2662_p10, %p2656_p7 }
  0x59   :  { %2666 = shalt.err (!%p2663_p11)
}
  0x5a   :  { %41 = dma.hbm_to_vmem [thread:$0]  %s3137_s2, 16, %s39_s25, [#allocation3]  }
  0x5b   :  { %s2796_s26 = smov [#allocation7]   ;;  %s2797_s29 = smov [#allocation10]  }
  0x5c   :  { %s61_s28 = sshll.u32 %s2796_s26, 4  ;;  %s89_s10 = sshll.u32 %s2797_s29, 4  ;;  %s62_s28 = int_to_ptr.vmem [resolvable:$true] %s61_s28  ;;  %s90_s10 = int_to_ptr.vmem [resolvable:$true] %s89_s10 }
  0x5d   :  { %s2667_s30 = scalar_lea.hbm %s3140_s5, 4096 }
  0x5e   :  { %p2668_p12 = scmp.ne.s32.totalorder %s3140_s5, %s2667_s30  ;;  %p2671_p13 = scmp.lt.u32.totalorder %s2667_s30, %s3140_s5 }
  0x60   :  { %p2673_p0 = pnand %p2671_p13, %p2668_p12 }
  0x62   :  { %2676 = shalt.err (!%p2673_p0)
}
  0x63   :  { %s2677_s2 = scalar_lea.vmem %s62_s28, 4096  ;;  %p2682_p2 = scmp.lt.s32.totalorder %s62_s28, %s62_s28 }
  0x64   :  { %p2678_p1 = scmp.ne.s32.totalorder %s62_s28, %s2677_s2  ;;  %p2683_p3 = scmp.lt.s32.totalorder %s2677_s2, %s2677_s2 }
  0x66   :  { %p2684_p4 = por %p2683_p3, %p2682_p2 }
  0x68   :  { %p2685_p5 = pnand %p2684_p4, %p2678_p1 }
  0x6a   :  { %2688 = shalt.err (!%p2685_p5)
}
  0x6b   :  { %67 = dma.hbm_to_vmem [thread:$0]  %s3140_s5, 4096, %s62_s28, [#allocation6], %s2790_s1, %s2790_s1, %s2791_s20  }
  0x6c   :  { %s2689_s23 = scalar_lea.hbm %s3144_s9, 2048 }
  0x6d   :  { %p2690_p6 = scmp.ne.s32.totalorder %s3144_s9, %s2689_s23  ;;  %p2693_p7 = scmp.lt.u32.totalorder %s2689_s23, %s3144_s9 }
  0x6f   :  { %p2695_p8 = pnand %p2693_p7, %p2690_p6 }
  0x71   :  { %2698 = shalt.err (!%p2695_p8)
}
  0x72   :  { %s2699_s27 = scalar_lea.vmem %s90_s10, 2048  ;;  %p2704_p10 = scmp.lt.s32.totalorder %s90_s10, %s90_s10 }
  0x73   :  { %p2700_p9 = scmp.ne.s32.totalorder %s90_s10, %s2699_s27  ;;  %p2705_p11 = scmp.lt.s32.totalorder %s2699_s27, %s2699_s27 }
  0x75   :  { %p2706_p12 = por %p2705_p11, %p2704_p10 }
  0x77   :  { %p2707_p13 = pnand %p2706_p12, %p2700_p9 }
  0x79   :  { %2710 = shalt.err (!%p2707_p13)
}
  0x7a   :  { %95 = dma.hbm_to_vmem [thread:$0]  %s3144_s9, 2048, %s90_s10, [#allocation9], %s2790_s1, %s2790_s1, %s2791_s20  }
  0x7b   :  { %s2798_s0 = smov [#allocation13]   ;;  %s2799_s7 = smov [#allocation16]  }
  0x7c   :  { %s113_s30 = sshll.u32 %s2798_s0, 4  ;;  %s141_s24 = sshll.u32 %s2799_s7, 4  ;;  %s114_s30 = int_to_ptr.vmem [resolvable:$true] %s113_s30  ;;  %s142_s24 = int_to_ptr.vmem [resolvable:$true] %s141_s24 }
  0x7d   :  { %s2711_s2 = scalar_lea.hbm %s3146_s11, 4096 }
  0x7e   :  { %p2712_p0 = scmp.ne.s32.totalorder %s3146_s11, %s2711_s2  ;;  %p2715_p1 = scmp.lt.u32.totalorder %s2711_s2, %s3146_s11 }
  0x80   :  { %p2717_p2 = pnand %p2715_p1, %p2712_p0 }
  0x82   :  { %2720 = shalt.err (!%p2717_p2)
}
  0x83   :  { %s2721_s9 = scalar_lea.vmem %s114_s30, 4096  ;;  %p2726_p4 = scmp.lt.s32.totalorder %s114_s30, %s114_s30 }
  0x84   :  { %p2722_p3 = scmp.ne.s32.totalorder %s114_s30, %s2721_s9  ;;  %p2727_p5 = scmp.lt.s32.totalorder %s2721_s9, %s2721_s9 }
  0x86   :  { %p2728_p6 = por %p2727_p5, %p2726_p4 }
  0x88   :  { %p2729_p7 = pnand %p2728_p6, %p2722_p3 }
  0x8a   :  { %2732 = shalt.err (!%p2729_p7)
}
  0x8b   :  { %119 = dma.hbm_to_vmem [thread:$0]  %s3146_s11, 4096, %s114_s30, [#allocation12], %s2790_s1, %s2790_s1, %s2791_s20  }
  0x8c   :  { %s2733_s26 = scalar_lea.hbm %s3150_s15, 2048 }
  0x8d   :  { %p2734_p8 = scmp.ne.s32.totalorder %s3150_s15, %s2733_s26  ;;  %p2737_p9 = scmp.lt.u32.totalorder %s2733_s26, %s3150_s15 }
  0x8f   :  { %p2739_p10 = pnand %p2737_p9, %p2734_p8 }
  0x91   :  { %2742 = shalt.err (!%p2739_p10)
}
  0x92   :  { %s2743_s0 = scalar_lea.vmem %s142_s24, 2048  ;;  %p2748_p12 = scmp.lt.s32.totalorder %s142_s24, %s142_s24 }
  0x93   :  { %p2744_p11 = scmp.ne.s32.totalorder %s142_s24, %s2743_s0  ;;  %p2749_p13 = scmp.lt.s32.totalorder %s2743_s0, %s2743_s0 }
  0x95   :  { %p2750_p0 = por %p2749_p13, %p2748_p12 }
  0x97   :  { %p2751_p1 = pnand %p2750_p0, %p2744_p11 }
  0x99   :  { %2754 = shalt.err (!%p2751_p1)
}
  0x9a   :  { %s2800_s11 = smov 64   ;;  %s2801_s1 = smov 4  }
  0x9b   :  { %147 = dma.hbm_to_vmem [thread:$0]  %s3150_s15, 2048, %s142_s24, [#allocation15], %s2800_s11, %s2800_s11, %s2801_s1  }
  0x9c   :  { %2777 = dma.done.wait [#allocation3], 16  }
  0x9d   :  { %2778 = vsyncadd [#allocation3], 4294967280 }
  0x9e   :  { %2779 = dma.done.wait [#allocation6], 6144  }
  0x9f   :  { %2780 = vsyncadd [#allocation6], 4294961152 }
  0xa0   :  { %2781 = dma.done.wait [#allocation9], 6144  }
  0xa1   :  { %2782 = vsyncadd [#allocation9], 4294961152 }
  0xa2   :  { %2783 = dma.done.wait [#allocation12], 6144  }
  0xa3   :  { %2784 = vsyncadd [#allocation12], 4294961152 }
  0xa4   :  { %2785 = dma.done.wait [#allocation15], 6144  }
  0xa5   :  { %2786 = vsyncadd [#allocation15], 4294961152  ;;  %v2802_v0 = vmov 0   ;;  %v2273_v1 = vld [vmem:[#allocation5 + $0x4] ss:$8 sps:$4 sm:$0xff]   ;;  %s3157_s24 = sld [smem:[#allocation24_spill]] }
  0xa6   :  { %541 = vmatprep.mubr.bf16.mxu0 %v2802_v0  ;;  %2272 = vset.pattern.permute.xlu0 %v2802_v0  ;;  %v2275_v2 = vld [vmem:[#allocation5] ss:$8 sps:$4 sm:$0xff]   ;;  %v2276_v3 = vld [vmem:[#allocation5 + $0x14] ss:$8 sps:$4 sm:$0xff]   ;;  %v2278_v4 = vld [vmem:[#allocation5 + $0x10] ss:$8 sps:$4 sm:$0xff]  }
  0xa7   :  { %509 = vmatprep.subr.bf16.mxu0 %v2273_v1  ;;  %v2279_v5 = vld [vmem:[#allocation5 + $0x24] ss:$8 sps:$4 sm:$0xff]   ;;  %v2281_v6 = vld [vmem:[#allocation5 + $0x20] ss:$8 sps:$4 sm:$0xff]   ;;  %v2282_v7 = vld [vmem:[#allocation5 + $0x34] ss:$8 sps:$4 sm:$0xff]  }
  0xa8   :  { %510 = vmatpush1.bf16.msra.mxu0 %v2275_v2  ;;  %v2284_v8 = vld [vmem:[#allocation5 + $0x30] ss:$8 sps:$4 sm:$0xff]   ;;  %v2285_v9 = vld [vmem:[#allocation5 + $0x44] ss:$8 sps:$4 sm:$0xff]   ;;  %v2299_v11 = vld [vmem:[#allocation7] ss:$8 sps:$4 sm:$0xff]  }
  0xa9   :  { %511 = vmatprep.subr.bf16.mxu0 %v2276_v3  ;;  %v2297_v10 = vld [vmem:[#allocation7 + $0x4] ss:$8 sps:$4 sm:$0xff]   ;;  %v2300_v12 = vld [vmem:[#allocation7 + $0x14] ss:$8 sps:$4 sm:$0xff]   ;;  %v2287_v13 = vld [vmem:[#allocation5 + $0x40] ss:$8 sps:$4 sm:$0xff]  }
  0xaa   :  { %758 = vmatprep.subr.bf16.mxu1 %v2297_v10  ;;  %v2302_v14 = vld [vmem:[#allocation7 + $0x10] ss:$8 sps:$4 sm:$0xff]   ;;  %v2303_v15 = vld [vmem:[#allocation7 + $0x24] ss:$8 sps:$4 sm:$0xff]   ;;  %v2288_v16 = vld [vmem:[#allocation5 + $0x54] ss:$8 sps:$4 sm:$0xff]  }
  0xab   :  { %759 = vmatpush1.bf16.msra.mxu1 %v2299_v11  ;;  %v2290_v17 = vld [vmem:[#allocation5 + $0x50] ss:$8 sps:$4 sm:$0xff]   ;;  %v2305_v18 = vld [vmem:[#allocation7 + $0x20] ss:$8 sps:$4 sm:$0xff]   ;;  %v2306_v19 = vld [vmem:[#allocation7 + $0x34] ss:$8 sps:$4 sm:$0xff]  }
  0xac   :  { %512 = vmatpush1.bf16.msra.mxu0 %v2278_v4  ;;  %760 = vmatprep.subr.bf16.mxu1 %v2300_v12  ;;  %v2291_v20 = vld [vmem:[#allocation5 + $0x64] ss:$8 sps:$4 sm:$0xff]   ;;  %v2293_v21 = vld [vmem:[#allocation5 + $0x60] ss:$8 sps:$4 sm:$0xff]   ;;  %v2308_v22 = vld [vmem:[#allocation7 + $0x30] ss:$8 sps:$4 sm:$0xff]  }
  0xad   :  { %513 = vmatprep.subr.bf16.mxu0 %v2279_v5  ;;  %v2309_v23 = vld [vmem:[#allocation7 + $0x44] ss:$8 sps:$4 sm:$0xff]   ;;  %v2294_v24 = vld [vmem:[#allocation5 + $0x74] ss:$8 sps:$4 sm:$0xff]   ;;  %v2296_v25 = vld [vmem:[#allocation5 + $0x70] ss:$8 sps:$4 sm:$0xff]  }
  0xae   :  { %v399_v26 = vld [vmem:[%s3157_s24] sm:$0xff]  ;;  %v2314_v29 = vld [vmem:[#allocation7 + $0x50] ss:$8 sps:$4 sm:$0xff]   ;;  %s3158_s2 = sld [smem:[#allocation25_spill]] }
  0xaf   :  { %761 = vmatpush1.bf16.msra.mxu1 %v2302_v14  ;;  %v2311_v27 = vld [vmem:[#allocation7 + $0x40] ss:$8 sps:$4 sm:$0xff]   ;;  %v2312_v28 = vld [vmem:[#allocation7 + $0x54] ss:$8 sps:$4 sm:$0xff]   ;;  %v2315_v30 = vld [vmem:[#allocation7 + $0x64] ss:$8 sps:$4 sm:$0xff]   ;;  %v400_v31 = vpack.c.bf16 %v399_v26, %v399_v26 }
  0xb0   :  { %514 = vmatpush1.bf16.msra.mxu0 %v2281_v6  ;;  %762 = vmatprep.subr.bf16.mxu1 %v2303_v15  ;;  %v2317_v32 = vld [vmem:[#allocation7 + $0x60] ss:$8 sps:$4 sm:$0xff]   ;;  %v2318_v33 = vld [vmem:[#allocation7 + $0x74] ss:$8 sps:$4 sm:$0xff]   ;;  %v2320_v34 = vld [vmem:[#allocation7 + $0x70] ss:$8 sps:$4 sm:$0xff]  }
  0xb1   :  { %515 = vmatprep.subr.bf16.mxu0 %v2282_v7  ;;  %v2321_v35 = vld [vmem:[#allocation7 + $0x84] ss:$8 sps:$4 sm:$0xff]   ;;  %v2323_v36 = vld [vmem:[#allocation7 + $0x80] ss:$8 sps:$4 sm:$0xff]   ;;  %v2324_v37 = vld [vmem:[#allocation7 + $0x94] ss:$8 sps:$4 sm:$0xff]  }
  0xb2   :  { %v2326_v38 = vld [vmem:[#allocation7 + $0x90] ss:$8 sps:$4 sm:$0xff]   ;;  %v2327_v39 = vld [vmem:[#allocation7 + $0xa4] ss:$8 sps:$4 sm:$0xff]   ;;  %v2329_v40 = vld [vmem:[#allocation7 + $0xa0] ss:$8 sps:$4 sm:$0xff]  }
  0xb3   :  { %763 = vmatpush1.bf16.msra.mxu1 %v2305_v18  ;;  %v2330_v41 = vld [vmem:[#allocation7 + $0xb4] ss:$8 sps:$4 sm:$0xff]   ;;  %v2332_v42 = vld [vmem:[#allocation7 + $0xb0] ss:$8 sps:$4 sm:$0xff]   ;;  %v2333_v43 = vld [vmem:[#allocation7 + $0xc4] ss:$8 sps:$4 sm:$0xff]  }
  0xb4   :  { %516 = vmatpush1.bf16.msra.mxu0 %v2284_v8  ;;  %764 = vmatprep.subr.bf16.mxu1 %v2306_v19  ;;  %v2335_v44 = vld [vmem:[#allocation7 + $0xc0] ss:$8 sps:$4 sm:$0xff]   ;;  %v2336_v45 = vld [vmem:[#allocation7 + $0xd4] ss:$8 sps:$4 sm:$0xff]   ;;  %v2338_v46 = vld [vmem:[#allocation7 + $0xd0] ss:$8 sps:$4 sm:$0xff]  }
  0xb5   :  { %517 = vmatprep.subr.bf16.mxu0 %v2285_v9  ;;  %v2339_v47 = vld [vmem:[#allocation7 + $0xe4] ss:$8 sps:$4 sm:$0xff]   ;;  %v2341_v48 = vld [vmem:[#allocation7 + $0xe0] ss:$8 sps:$4 sm:$0xff]   ;;  %v2342_v49 = vld [vmem:[#allocation7 + $0xf4] ss:$8 sps:$4 sm:$0xff]  }
  0xb6   :  { %v2344_v50 = vld [vmem:[#allocation7 + $0xf0] ss:$8 sps:$4 sm:$0xff]   ;;  %v178_v51 = vld [vmem:[%s3158_s2] sm:$0xff] }
  0xb7   :  { %765 = vmatpush1.bf16.msra.mxu1 %v2308_v22  ;;  %v2345_v52 = vld [vmem:[#allocation8] ss:$8 sps:$4 sm:$0xff]   ;;  %v2347_v53 = vld [vmem:[#allocation8 + $0x4] ss:$8 sps:$4 sm:$0xff]   ;;  %182 = vperm.xlu0 %2272, %v178_v51   ;;  %v2350_v54 = vld [vmem:[#allocation8 + $0x14] ss:$8 sps:$4 sm:$0xff]  }
  0xb8   :  { %518 = vmatpush1.bf16.msra.mxu0 %v2287_v13  ;;  %766 = vmatprep.subr.bf16.mxu1 %v2309_v23  ;;  %v2348_v55 = vld [vmem:[#allocation8 + $0x10] ss:$8 sps:$4 sm:$0xff]   ;;  %v2353_v56 = vld [vmem:[#allocation8 + $0x24] ss:$8 sps:$4 sm:$0xff]   ;;  %v2351_v57 = vld [vmem:[#allocation8 + $0x20] ss:$8 sps:$4 sm:$0xff]  }
  0xb9   :  { %519 = vmatprep.subr.bf16.mxu0 %v2288_v16  ;;  %v2356_v58 = vld [vmem:[#allocation8 + $0x34] ss:$8 sps:$4 sm:$0xff]   ;;  %v2354_v59 = vld [vmem:[#allocation8 + $0x30] ss:$8 sps:$4 sm:$0xff]   ;;  %v2359_v60 = vld [vmem:[#allocation8 + $0x44] ss:$8 sps:$4 sm:$0xff]  }
  0xba   :  { %v2357_v61 = vld [vmem:[#allocation8 + $0x40] ss:$8 sps:$4 sm:$0xff]   ;;  %v2362_v62 = vld [vmem:[#allocation8 + $0x54] ss:$8 sps:$4 sm:$0xff]   ;;  %v2360_v63 = vld [vmem:[#allocation8 + $0x50] ss:$8 sps:$4 sm:$0xff]  }
  0xbb   :  { %767 = vmatpush1.bf16.msra.mxu1 %v2311_v27  ;;  %v2365_v1 = vld [vmem:[#allocation8 + $0x64] ss:$8 sps:$4 sm:$0xff]   ;;  %v2363_v2 = vld [vmem:[#allocation8 + $0x60] ss:$8 sps:$4 sm:$0xff]   ;;  %v2368_v3 = vld [vmem:[#allocation8 + $0x74] ss:$8 sps:$4 sm:$0xff]  }
  0xbc   :  { %520 = vmatpush1.bf16.msra.mxu0 %v2290_v17  ;;  %768 = vmatprep.subr.bf16.mxu1 %v2312_v28  ;;  %v2366_v4 = vld [vmem:[#allocation8 + $0x70] ss:$8 sps:$4 sm:$0xff]   ;;  %v2371_v5 = vld [vmem:[#allocation8 + $0x84] ss:$8 sps:$4 sm:$0xff]   ;;  %v2369_v6 = vld [vmem:[#allocation8 + $0x80] ss:$8 sps:$4 sm:$0xff]   ;;  %v419_v17 = vlaneseq }
  0xbd   :  { %521 = vmatprep.subr.bf16.mxu0 %v2291_v20  ;;  %v2374_v7 = vld [vmem:[#allocation8 + $0x94] ss:$8 sps:$4 sm:$0xff]   ;;  %v2372_v8 = vld [vmem:[#allocation8 + $0x90] ss:$8 sps:$4 sm:$0xff]   ;;  %v2377_v9 = vld [vmem:[#allocation8 + $0xa4] ss:$8 sps:$4 sm:$0xff]  }
  0xbe   :  { %v2375_v10 = vld [vmem:[#allocation8 + $0xa0] ss:$8 sps:$4 sm:$0xff]   ;;  %v2380_v11 = vld [vmem:[#allocation8 + $0xb4] ss:$8 sps:$4 sm:$0xff]   ;;  %v2378_v12 = vld [vmem:[#allocation8 + $0xb0] ss:$8 sps:$4 sm:$0xff]  }
  0xbf   :  { %769 = vmatpush1.bf16.msra.mxu1 %v2314_v29  ;;  %v2383_v13 = vld [vmem:[#allocation8 + $0xc4] ss:$8 sps:$4 sm:$0xff]   ;;  %v2381_v14 = vld [vmem:[#allocation8 + $0xc0] ss:$8 sps:$4 sm:$0xff]   ;;  %v2386_v15 = vld [vmem:[#allocation8 + $0xd4] ss:$8 sps:$4 sm:$0xff]  }
  0xc0   :  { %522 = vmatpush1.bf16.msra.mxu0 %v2293_v21  ;;  %770 = vmatprep.subr.bf16.mxu1 %v2315_v30  ;;  %v2384_v16 = vld [vmem:[#allocation8 + $0xd0] ss:$8 sps:$4 sm:$0xff]   ;;  %v420_v18 = vshrl.u32 %v419_v17, 7  ;;  %v417_v20 = vld [vmem:[%s3139_s4] sm:$0x3] }
  0xc1   :  { %523 = vmatprep.subr.bf16.mxu0 %v2294_v24 }
  0xc2   :  { %v3037_v19 = vsub.s32 0, %v420_v18  ;;  %v3042_v21 = vsub.s32 1, %v420_v18 }
  0xc3   :  { %771 = vmatpush1.bf16.msra.mxu1 %v2317_v32 }
  0xc4   :  { %524 = vmatpush1.bf16.msra.mxu0 %v2296_v25  ;;  %772 = vmatprep.subr.bf16.mxu1 %v2318_v33  ;;  %v422_v22 = vrot.slane %v417_v20, %v3037_v19  ;;  %v426_v23 = vrot.slane %v417_v20, %v3042_v21 }
  0xc5   :  { %1007 = vmatprep.subr.bf16.mxu0 %v2347_v53 }
  0xc7   :  { %542 = vmatmul.mubr.bf16.vlgmr.msra.gmra.mrb[0].mxu0 %v400_v31  ;;  %773 = vmatpush1.bf16.msra.mxu1 %v2320_v34  ;;  %v2023_v34 = vld [vmem:[#allocation2] ss:$0 sm:$0xff] }
  0xc8   :  { %774 = vmatprep.subr.bf16.mxu1 %v2321_v35  ;;  %1008 = vmatpush1.bf16.msra.mxu0 %v2345_v52  ;;  %v2805_v52 = vmov 2131351028  }
  0xc9   :  { %1009 = vmatprep.subr.bf16.mxu0 %v2350_v54  ;;  %v2806_v54 = vmov 2102212464  }
  0xcb   :  { %775 = vmatpush1.bf16.msra.mxu1 %v2323_v36 }
  0xcc   :  { %776 = vmatprep.subr.bf16.mxu1 %v2324_v37  ;;  %1010 = vmatpush1.bf16.msra.mxu0 %v2348_v55 }
  0xcd   :  { %1011 = vmatprep.subr.bf16.mxu0 %v2353_v56  ;;  %v2807_v56 = vmov 920167782  }
  0xcf   :  { %777 = vmatpush1.bf16.msra.mxu1 %v2326_v38 }
  0xd0   :  { %778 = vmatprep.subr.bf16.mxu1 %v2327_v39  ;;  %1012 = vmatpush1.bf16.msra.mxu0 %v2351_v57 }
  0xd1   :  { %1013 = vmatprep.subr.bf16.mxu0 %v2356_v58 }
  0xd3   :  { %779 = vmatpush1.bf16.msra.mxu1 %v2329_v40 }
  0xd4   :  { %780 = vmatprep.subr.bf16.mxu1 %v2330_v41  ;;  %1014 = vmatpush1.bf16.msra.mxu0 %v2354_v59 }
  0xd5   :  { %1015 = vmatprep.subr.bf16.mxu0 %v2359_v60 }
  0xd7   :  { %781 = vmatpush1.bf16.msra.mxu1 %v2332_v42 }
  0xd8   :  { %782 = vmatprep.subr.bf16.mxu1 %v2333_v43  ;;  %1016 = vmatpush1.bf16.msra.mxu0 %v2357_v61 }
  0xd9   :  { %1017 = vmatprep.subr.bf16.mxu0 %v2362_v62 }
  0xdb   :  { %783 = vmatpush1.bf16.msra.mxu1 %v2335_v44 }
  0xdc   :  { %784 = vmatprep.subr.bf16.mxu1 %v2336_v45  ;;  %1018 = vmatpush1.bf16.msra.mxu0 %v2360_v63  ;;  %v2808_v63 = vmov 1326507024  }
  0xdd   :  { %1019 = vmatprep.subr.bf16.mxu0 %v2365_v1 }
  0xdf   :  { %785 = vmatpush1.bf16.msra.mxu1 %v2338_v46 }
  0xe0   :  { %786 = vmatprep.subr.bf16.mxu1 %v2339_v47  ;;  %1020 = vmatpush1.bf16.msra.mxu0 %v2363_v2 }
  0xe1   :  { %1021 = vmatprep.subr.bf16.mxu0 %v2368_v3 }
  0xe3   :  { %787 = vmatpush1.bf16.msra.mxu1 %v2341_v48  ;;  %v2803_v48 = vmov 683565275  }
  0xe4   :  { %788 = vmatprep.subr.bf16.mxu1 %v2342_v49  ;;  %1022 = vmatpush1.bf16.msra.mxu0 %v2366_v4 }
  0xe5   :  { %1023 = vmatprep.subr.bf16.mxu0 %v2371_v5 }
  0xe7   :  { %789 = vmatpush1.bf16.msra.mxu1 %v2344_v50  ;;  %v2804_v50 = vmov 2475754826  }
  0xe8   :  { %1024 = vmatpush1.bf16.msra.mxu0 %v2369_v6 }
  0xe9   :  { %1025 = vmatprep.subr.bf16.mxu0 %v2374_v7 }
  0xec   :  { %1026 = vmatpush1.bf16.msra.mxu0 %v2372_v8 }
  0xed   :  { %1027 = vmatprep.subr.bf16.mxu0 %v2377_v9 }
  0xf0   :  { %1028 = vmatpush1.bf16.msra.mxu0 %v2375_v10 }
  0xf1   :  { %1029 = vmatprep.subr.bf16.mxu0 %v2380_v11 }
  0xf4   :  { %1030 = vmatpush1.bf16.msra.mxu0 %v2378_v12 }
  0xf5   :  { %1031 = vmatprep.subr.bf16.mxu0 %v2383_v13 }
  0xf8   :  { %1032 = vmatpush1.bf16.msra.mxu0 %v2381_v14 }
  0xf9   :  { %1033 = vmatprep.subr.bf16.mxu0 %v2386_v15 }
  0xfc   :  { %1034 = vmatpush1.bf16.msra.mxu0 %v2384_v16 }
 0x136   :  { %v183_v35 = vpop.permute.xlu0 %182 }
 0x137   :  { %v3046_v36 = vmul.f32 %v2023_v34, %v183_v35 }
 0x139   :  { %v195_v37 = vand.u32 2139095040, %v3046_v36  ;;  %v192_v39 = vand.u32 2147483647, %v3046_v36  ;;  %vm194_vm7 = vcmp.lt.s32.totalorder %v3046_v36, 0  ;;  %vm284_vm9 = vweird.f32 %v3046_v36 }
 0x13b   :  { %v196_v38 = vshrl.u32 %v195_v37, 23  ;;  %v199_v42 = vand.u32 8388607, %v192_v39  ;;  %vm3069_vm8 = vcmp.le.f32.partialorder %v192_v39, 0.7853982 }
 0x13c   :  { %v2425_v39 = vld [vmem:[#allocation11 + $0x54] ss:$8 sps:$4 sm:$0xff]  }
 0x13d   :  { %v2024_v40 = vadd.s32 4294967169, %v196_v38  ;;  %v200_v45 = vor.u32 8388608, %v199_v42 }
 0x13f   :  { %v202_v41 = vadd.s32 1, %v2024_v40  ;;  %v240_v2 = vshll.u32 %v200_v45, 8 }
 0x141   :  { %vm203_vm0 = vcmp.gt.s32.totalorder %v202_v41, 0 }
 0x142   :  { %v204_v43 = vsel %vm203_vm0, %v202_v41, 0 }
 0x143   :  { %v206_v44 = vand.u32 31, %v204_v43  ;;  %v205_v46 = vshrl.u32 %v204_v43, 5 }
 0x145   :  { %v207_v47 = vsub.s32 32, %v206_v44  ;;  %v209_v49 = vshll.u32 %v2803_v48, %v206_v44  ;;  %v212_v51 = vshll.u32 %v2804_v50, %v206_v44  ;;  %v215_v53 = vshll.u32 %v2805_v52, %v206_v44 }
 0x146   :  { %v218_v55 = vshll.u32 %v2806_v54, %v206_v44  ;;  %v221_v57 = vshll.u32 %v2807_v56, %v206_v44  ;;  %vm224_vm1 = vcmp.lt.s32.totalorder %v205_v46, 1  ;;  %vm227_vm2 = vcmp.lt.s32.totalorder %v205_v46, 4 }
 0x147   :  { %v208_v58 = vshrl.u32 %v2803_v48, %v207_v47  ;;  %v210_v59 = vshrl.u32 %v2804_v50, %v207_v47  ;;  %v213_v60 = vshrl.u32 %v2805_v52, %v207_v47  ;;  %v216_v61 = vshrl.u32 %v2806_v54, %v207_v47  ;;  %v2389_v48 = vld [vmem:[#allocation8 + $0xe4] ss:$8 sps:$4 sm:$0xff]   ;;  %v2392_v52 = vld [vmem:[#allocation8 + $0xf4] ss:$8 sps:$4 sm:$0xff]  }
 0x148   :  { %v219_v62 = vshrl.u32 %v2807_v56, %v207_v47  ;;  %v222_v1 = vshrl.u32 %v2808_v63, %v207_v47  ;;  %vm225_vm3 = vcmp.lt.s32.totalorder %v205_v46, 2  ;;  %vm226_vm4 = vcmp.lt.s32.totalorder %v205_v46, 3  ;;  %1035 = vmatprep.subr.bf16.mxu0 %v2389_v48  ;;  %v2393_v56 = vld [vmem:[#allocation11] ss:$8 sps:$4 sm:$0xff]   ;;  %v2461_v48 = vld [vmem:[#allocation13 + $0x64] ss:$8 sps:$4 sm:$0xff]  }
 0x149   :  { %v211_v3 = vor.u32 %v210_v59, %v209_v49  ;;  %v214_v4 = vor.u32 %v213_v60, %v212_v51  ;;  %v217_v5 = vor.u32 %v216_v61, %v215_v53  ;;  %v2387_v49 = vld [vmem:[#allocation8 + $0xe0] ss:$8 sps:$4 sm:$0xff]   ;;  %v2390_v53 = vld [vmem:[#allocation8 + $0xf0] ss:$8 sps:$4 sm:$0xff]   ;;  %v2401_v59 = vld [vmem:[#allocation11 + $0x14] ss:$8 sps:$4 sm:$0xff]  }
 0x14a   :  { %v220_v6 = vor.u32 %v219_v62, %v218_v55  ;;  %v223_v7 = vor.u32 %v222_v1, %v221_v57  ;;  %1036 = vmatpush1.bf16.msra.mxu0 %v2387_v49  ;;  %v2395_v57 = vld [vmem:[#allocation11 + $0x4] ss:$8 sps:$4 sm:$0xff]   ;;  %v2399_v61 = vld [vmem:[#allocation11 + $0x10] ss:$8 sps:$4 sm:$0xff]   ;;  %v2405_v1 = vld [vmem:[#allocation11 + $0x20] ss:$8 sps:$4 sm:$0xff]  }
 0x14b   :  { %v228_v8 = vsel %vm224_vm1, %v208_v58, %v211_v3  ;;  %v229_v9 = vsel %vm227_vm2, %v217_v5, 2102212464  ;;  %v232_v10 = vsel %vm224_vm1, %v211_v3, %v214_v4  ;;  %v236_v11 = vsel %vm224_vm1, %v214_v4, %v217_v5  ;;  %1037 = vmatprep.subr.bf16.mxu0 %v2392_v52  ;;  %v2398_v58 = vld [vmem:[#allocation10 + $0x4] ss:$8 sps:$4 sm:$0xff]   ;;  %1162 = vmatprep.subr.bf16.mxu1 %v2395_v57  ;;  %v2459_v49 = vld [vmem:[#allocation13 + $0x60] ss:$8 sps:$4 sm:$0xff]  }
 0x14c   :  { %v230_v12 = vsel %vm226_vm4, %v214_v4, %v229_v9  ;;  %v233_v13 = vsel %vm227_vm2, %v220_v6, 920167782  ;;  %v237_v14 = vsel %vm227_vm2, %v223_v7, 1326507024  ;;  %v2407_v62 = vld [vmem:[#allocation11 + $0x24] ss:$8 sps:$4 sm:$0xff]  }
 0x14d   :  { %v234_v15 = vsel %vm226_vm4, %v217_v5, %v233_v13  ;;  %v238_v16 = vsel %vm226_vm4, %v220_v6, %v237_v14  ;;  %v231_v17 = vsel %vm225_vm3, %v228_v8, %v230_v12  ;;  %v2411_v5 = vld [vmem:[#allocation11 + $0x30] ss:$8 sps:$4 sm:$0xff]   ;;  %v2419_v7 = vld [vmem:[#allocation11 + $0x44] ss:$8 sps:$4 sm:$0xff]   ;;  %v2417_v8 = vld [vmem:[#allocation11 + $0x40] ss:$8 sps:$4 sm:$0xff]  }
 0x14e   :  { %v235_v18 = vsel %vm225_vm3, %v232_v10, %v234_v15  ;;  %v239_v20 = vsel %vm225_vm3, %v236_v11, %v238_v16  ;;  %1038 = vmatpush1.bf16.msra.mxu0 %v2390_v53  ;;  %v2423_v10 = vld [vmem:[#allocation11 + $0x50] ss:$8 sps:$4 sm:$0xff]   ;;  %v2431_v11 = vld [vmem:[#allocation11 + $0x64] ss:$8 sps:$4 sm:$0xff]   ;;  %v2429_v13 = vld [vmem:[#allocation11 + $0x60] ss:$8 sps:$4 sm:$0xff]  }
 0x14f   :  { %1283 = vmatprep.subr.bf16.mxu0 %v2398_v58  ;;  %v2437_v14 = vld [vmem:[#allocation11 + $0x74] ss:$8 sps:$4 sm:$0xff]   ;;  %v2467_v52 = vld [vmem:[#allocation13 + $0x84] ss:$8 sps:$4 sm:$0xff]   ;;  %v2465_v53 = vld [vmem:[#allocation13 + $0x80] ss:$8 sps:$4 sm:$0xff]  }
 0x150   :  { %v2471_v57 = vld [vmem:[#allocation13 + $0xa0] ss:$8 sps:$4 sm:$0xff]   ;;  %v2476_v58 = vld [vmem:[#allocation13 + $0xb4] ss:$8 sps:$4 sm:$0xff]  }
 0x151   :  { %v586_v3 = vld [vmem:[%s3141_s6] sm:$0x3] }
 0x19a   :  { %v543_v24 = vpop.f32.mrb[0].mxu0 }
 0x19b   :  { %v544_v25 = vadd.f32 %v543_v24, %v422_v22  ;;  %v545_v26 = vpop.f32.mrb[1].mxu0 }
 0x19c   :  { %v546_v27 = vadd.f32 %v545_v26, %v426_v23  ;;  %v547_v28 = vpop.f32.mrb[2].mxu0  ;;  %v3053_v22 = vmul.u32.u64.low %v240_v2, %v239_v20  ;;  %v3054_v23 = vmul.u32.u64.high %v240_v2, %v239_v20, %v3053_v22  ;;  %v247_v26 = vmul.u32 %v240_v2, %v231_v17 }
 0x19d   :  { %v550_v29 = vmax.f32 %v544_v25, 0.0  ;;  %v548_v30 = vpop.f32.mrb[3].mxu0  ;;  %v3056_v24 = vmul.u32.u64.low %v240_v2, %v235_v18  ;;  %v3057_v25 = vmul.u32.u64.high %v240_v2, %v235_v18, %v3056_v24  ;;  %v2413_v2 = vld [vmem:[#allocation11 + $0x34] ss:$8 sps:$4 sm:$0xff]   ;;  %v2435_v18 = vld [vmem:[#allocation11 + $0x70] ss:$8 sps:$4 sm:$0xff]  }
 0x19e   :  { %v551_v31 = vmax.f32 %v546_v27, 0.0 }
 0x19f   :  { %v552_v33 = vpack.c.bf16 %v550_v29, %v550_v29  ;;  %vm249_vm5 = vc.u32 %v3054_v23, %v3056_v24  ;;  %v250_v27 = vadd.s32 1, %v3057_v25  ;;  %v248_v42 = vadd.s32 %v3056_v24, %v3054_v23 }
 0x1a0   :  { %v553_v32 = vpack.c.bf16 %v551_v31, %v551_v31 }
 0x1a1   :  { %v251_v28 = vsel %vm249_vm5, %v250_v27, %v3057_v25  ;;  %v2443_v27 = vld [vmem:[#allocation13 + $0x4] ss:$8 sps:$4 sm:$0xff]  }
 0x1a2   :  { %790 = vmatprep.mubr.bf16.mxu1 %v553_v32  ;;  %v252_v29 = vadd.s32 %v251_v28, %v247_v26 }
 0x1a3   :  { %791 = vmatmul.mubr.bf16.vlgmr.msra.gmra.mrb[0].mxu1 %v552_v33 }
 0x1a4   :  { %1194 = vmatprep.mubr.bf16.mxu1 %v2802_v0  ;;  %v253_v30 = vadd.s32 536870912, %v252_v29  ;;  %1163 = vmatpush1.bf16.msra.mxu1 %v2393_v56  ;;  %v2473_v56 = vld [vmem:[#allocation13 + $0xa4] ss:$8 sps:$4 sm:$0xff]  }
 0x1a5   :  { %1164 = vmatprep.subr.bf16.mxu1 %v2401_v59  ;;  %v2474_v59 = vld [vmem:[#allocation13 + $0xb0] ss:$8 sps:$4 sm:$0xff]  }
 0x1a6   :  { %v3062_v31 = vshrl.u32 %v253_v30, 30 }
 0x1a8   :  { %v255_v32 = vshll.u32 %v3062_v31, 30  ;;  %1165 = vmatpush1.bf16.msra.mxu1 %v2399_v61  ;;  %v278_v9 = vsub.s32 4, %v3062_v31  ;;  %v2477_v61 = vld [vmem:[#allocation13 + $0xc0] ss:$8 sps:$4 sm:$0xff]  }
 0x1a9   :  { %1166 = vmatprep.subr.bf16.mxu1 %v2407_v62  ;;  %v2482_v62 = vld [vmem:[#allocation13 + $0xd4] ss:$8 sps:$4 sm:$0xff]  }
 0x1aa   :  { %v256_v33 = vsub.s32 %v252_v29, %v255_v32  ;;  %v279_v12 = vsel %vm194_vm7, %v278_v9, %v3062_v31 }
 0x1ab   :  { %v281_v16 = vsel %vm3069_vm8, 0, %v279_v12 }
 0x1ac   :  { %v258_v34 = vsub.s32 0, %v256_v33  ;;  %1167 = vmatpush1.bf16.msra.mxu1 %v2405_v1  ;;  %v388_v22 = vadd.s32 3, %v281_v16  ;;  %v285_v24 = vand.u32 3, %v281_v16  ;;  %v2485_v1 = vld [vmem:[#allocation13 + $0xe4] ss:$8 sps:$4 sm:$0xff]  }
 0x1ad   :  { %1168 = vmatprep.subr.bf16.mxu1 %v2413_v2  ;;  %v2483_v2 = vld [vmem:[#allocation13 + $0xe0] ss:$8 sps:$4 sm:$0xff]   ;;  %v2404_v16 = vld [vmem:[#allocation10 + $0x14] ss:$8 sps:$4 sm:$0xff]  }
 0x1ae   :  { %v2025_v35 = vmin.u32 %v258_v34, %v256_v33  ;;  %v389_v25 = vand.u32 3, %v388_v22  ;;  %vm286_vm10 = vcmp.lt.s32.totalorder %v285_v24, 2  ;;  %vm287_vm11 = vcmp.eq.s32.totalorder %v285_v24, 0  ;;  %v2416_v22 = vld [vmem:[#allocation10 + $0x34] ss:$8 sps:$4 sm:$0xff]  }
 0x1af   :  { %vm290_vm12 = vcmp.eq.s32.totalorder %v285_v24, 2  ;;  %v2422_v24 = vld [vmem:[#allocation10 + $0x44] ss:$8 sps:$4 sm:$0xff]  }
 0x1b0   :  { %v260_v37 = vclz %v2025_v35  ;;  %1169 = vmatpush1.bf16.msra.mxu1 %v2411_v5  ;;  %vm390_vm13 = vcmp.lt.s32.totalorder %v389_v25, 2  ;;  %vm391_vm14 = vcmp.eq.s32.totalorder %v389_v25, 0  ;;  %vm394_vm15 = vcmp.eq.s32.totalorder %v389_v25, 2  ;;  %v2441_v35 = vld [vmem:[#allocation13] ss:$8 sps:$4 sm:$0xff]  }
 0x1b1   :  { %1170 = vmatprep.subr.bf16.mxu1 %v2419_v7  ;;  %v595_v5 = vrot.slane %v586_v3, %v3042_v21  ;;  %v2420_v25 = vld [vmem:[#allocation10 + $0x40] ss:$8 sps:$4 sm:$0xff]  }
 0x1b2   :  { %v2026_v38 = vadd.s32 4294967294, %v260_v37 }
 0x1b4   :  { %vm2027_vm6 = vcmp.lt.s32.totalorder %v2026_v38, 0  ;;  %1171 = vmatpush1.bf16.msra.mxu1 %v2417_v8 }
 0x1b5   :  { %v263_v40 = vsel %vm2027_vm6, 0, %v2026_v38  ;;  %1172 = vmatprep.subr.bf16.mxu1 %v2425_v39  ;;  %v2446_v38 = vld [vmem:[#allocation13 + $0x14] ss:$8 sps:$4 sm:$0xff]  }
 0x1b6   :  { %v268_v41 = vsub.s32 4294967266, %v263_v40  ;;  %v264_v43 = vsub.s32 32, %v263_v40  ;;  %v265_v45 = vshll.u32 %v256_v33, %v263_v40  ;;  %v2444_v40 = vld [vmem:[#allocation13 + $0x10] ss:$8 sps:$4 sm:$0xff]  }
 0x1b8   :  { %v269_v44 = vadd.s32 127, %v268_v41  ;;  %v266_v46 = vshrl.u32 %v248_v42, %v264_v43  ;;  %1173 = vmatpush1.bf16.msra.mxu1 %v2423_v10  ;;  %v2449_v41 = vld [vmem:[#allocation13 + $0x24] ss:$8 sps:$4 sm:$0xff]   ;;  %v2447_v42 = vld [vmem:[#allocation13 + $0x20] ss:$8 sps:$4 sm:$0xff]  }
 0x1b9   :  { %1174 = vmatprep.subr.bf16.mxu1 %v2431_v11  ;;  %v2452_v43 = vld [vmem:[#allocation13 + $0x34] ss:$8 sps:$4 sm:$0xff]  }
 0x1ba   :  { %v270_v47 = vshll.u32 %v269_v44, 23  ;;  %v267_v50 = vor.u32 %v266_v46, %v265_v45  ;;  %v2450_v44 = vld [vmem:[#allocation13 + $0x30] ss:$8 sps:$4 sm:$0xff]   ;;  %v2455_v45 = vld [vmem:[#allocation13 + $0x44] ss:$8 sps:$4 sm:$0xff]  }
 0x1bb   :  { %v2458_v46 = vld [vmem:[#allocation13 + $0x54] ss:$8 sps:$4 sm:$0xff]  }
 0x1bc   :  { %v271_v51 = vor.u32 4788187, %v270_v47  ;;  %v274_v55 = vcvt.s32.f32 %v267_v50  ;;  %1175 = vmatpush1.bf16.msra.mxu1 %v2429_v13  ;;  %v2456_v47 = vld [vmem:[#allocation13 + $0x50] ss:$8 sps:$4 sm:$0xff]   ;;  %v2464_v50 = vld [vmem:[#allocation13 + $0x74] ss:$8 sps:$4 sm:$0xff]  }
 0x1bd   :  { %1176 = vmatprep.subr.bf16.mxu1 %v2437_v14  ;;  %v2396_v14 = vld [vmem:[#allocation10] ss:$8 sps:$4 sm:$0xff]  }
 0x1be   :  { %v272_v54 = vand.u32 2147483647, %v271_v51  ;;  %v2462_v51 = vld [vmem:[#allocation13 + $0x70] ss:$8 sps:$4 sm:$0xff]  }
 0x1c0   :  { %v275_v60 = vmul.f32 %v274_v55, %v272_v54  ;;  %1177 = vmatpush1.bf16.msra.mxu1 %v2435_v18  ;;  %v2470_v54 = vld [vmem:[#allocation13 + $0x94] ss:$8 sps:$4 sm:$0xff]   ;;  %v2468_v55 = vld [vmem:[#allocation13 + $0x90] ss:$8 sps:$4 sm:$0xff]   ;;  %v2410_v18 = vld [vmem:[#allocation10 + $0x24] ss:$8 sps:$4 sm:$0xff]  }
 0x1c1   :  { %1518 = vmatprep.subr.bf16.mxu1 %v2443_v27  ;;  %v2426_v27 = vld [vmem:[#allocation10 + $0x50] ss:$8 sps:$4 sm:$0xff]  }
 0x1c2   :  { %v276_v63 = vxor.u32 2147483648, %v275_v60 }
 0x1c4   :  { %v277_v4 = vsel %vm194_vm7, %v276_v63, %v275_v60  ;;  %v2479_v60 = vld [vmem:[#allocation13 + $0xc4] ss:$8 sps:$4 sm:$0xff]   ;;  %v2480_v63 = vld [vmem:[#allocation13 + $0xd0] ss:$8 sps:$4 sm:$0xff]  }
 0x1c5   :  { %v280_v6 = vsel %vm3069_vm8, %v3046_v36, %v277_v4  ;;  %v2453_v36 = vld [vmem:[#allocation13 + $0x40] ss:$8 sps:$4 sm:$0xff]   ;;  %v591_v4 = vrot.slane %v586_v3, %v3037_v19  ;;  %v2528_v3 = vld [vmem:[#allocation14 + $0xd0] ss:$8 sps:$4 sm:$0xff]  }
 0x1c6   :  { %2553 = vsinq.f32 %v280_v6 }
 0x1c7   :  { %2555 = vcosq.f32 %v280_v6 }
 0x1d0   :  { %v2554_v15 = vpop.eup %2553 }
 0x1d1   :  { %v2556_v17 = vpop.eup %2555  ;;  %v288_v20 = vxor.u32 2147483648, %v2554_v15 }
 0x1d2   :  { %v291_v23 = vxor.u32 2147483648, %v2556_v17 }
 0x1d3   :  { %v289_v26 = vsel %vm287_vm11, %v2556_v17, %v288_v20  ;;  %v393_v28 = vsel %vm391_vm14, %v2556_v17, %v288_v20  ;;  %v2402_v17 = vld [vmem:[#allocation10 + $0x10] ss:$8 sps:$4 sm:$0xff]   ;;  %v2408_v20 = vld [vmem:[#allocation10 + $0x20] ss:$8 sps:$4 sm:$0xff]  }
 0x1d4   :  { %v396_v29 = vsel %vm394_vm15, %v291_v23, %v2554_v15  ;;  %v292_v30 = vsel %vm290_vm12, %v291_v23, %v2554_v15  ;;  %v2414_v23 = vld [vmem:[#allocation10 + $0x30] ss:$8 sps:$4 sm:$0xff]  }
 0x1d5   :  { %v397_v31 = vsel %vm390_vm13, %v393_v28, %v396_v29  ;;  %v293_v32 = vsel %vm286_vm10, %v289_v26, %v292_v30  ;;  %v2428_v26 = vld [vmem:[#allocation10 + $0x54] ss:$8 sps:$4 sm:$0xff]   ;;  %v2434_v28 = vld [vmem:[#allocation10 + $0x64] ss:$8 sps:$4 sm:$0xff]   ;;  %v2438_v30 = vld [vmem:[#allocation10 + $0x70] ss:$8 sps:$4 sm:$0xff]  }
 0x1d6   :  { %v398_v33 = vsel %vm284_vm9, nan, %v397_v31  ;;  %v3089_v34 = vsel %vm284_vm9, nan, %v293_v32  ;;  %v2440_v29 = vld [vmem:[#allocation10 + $0x74] ss:$8 sps:$4 sm:$0xff]  }
 0x1d7   :  { %v1065_v37 = vpack.c.bf16 %v398_v33, %v398_v33  ;;  %v1048_v31 = vpack.c.bf16 %v3089_v34, %v3089_v34  ;;  %v2488_v32 = vld [vmem:[#allocation13 + $0xf4] ss:$8 sps:$4 sm:$0xff]   ;;  %v2486_v33 = vld [vmem:[#allocation13 + $0xf0] ss:$8 sps:$4 sm:$0xff]  }
 0x1d9   :  { %1195 = vmatmul.mubr.bf16.vlgmr.msra.gmra.mrb[4].mxu1 %v1065_v37  ;;  %v2491_v37 = vld [vmem:[#allocation14 + $0x4] ss:$8 sps:$4 sm:$0xff]  }
 0x1da   :  { %1519 = vmatpush1.bf16.msra.mxu1 %v2441_v35  ;;  %v2489_v35 = vld [vmem:[#allocation14] ss:$8 sps:$4 sm:$0xff]  }
 0x1db   :  { %1520 = vmatprep.subr.bf16.mxu1 %v2446_v38  ;;  %v2494_v38 = vld [vmem:[#allocation14 + $0x14] ss:$8 sps:$4 sm:$0xff]  }
 0x1de   :  { %1521 = vmatpush1.bf16.msra.mxu1 %v2444_v40  ;;  %v2492_v40 = vld [vmem:[#allocation14 + $0x10] ss:$8 sps:$4 sm:$0xff]  }
 0x1df   :  { %1522 = vmatprep.subr.bf16.mxu1 %v2449_v41 }
 0x1e2   :  { %1523 = vmatpush1.bf16.msra.mxu1 %v2447_v42  ;;  %v2497_v42 = vld [vmem:[#allocation14 + $0x24] ss:$8 sps:$4 sm:$0xff]  }
 0x1e3   :  { %1524 = vmatprep.subr.bf16.mxu1 %v2452_v43 }
 0x1e6   :  { %1525 = vmatpush1.bf16.msra.mxu1 %v2450_v44 }
 0x1e7   :  { %1526 = vmatprep.subr.bf16.mxu1 %v2455_v45  ;;  %v2495_v45 = vld [vmem:[#allocation14 + $0x20] ss:$8 sps:$4 sm:$0xff]  }
 0x1ea   :  { %1527 = vmatpush1.bf16.msra.mxu1 %v2453_v36  ;;  %v2500_v36 = vld [vmem:[#allocation14 + $0x34] ss:$8 sps:$4 sm:$0xff]  }
 0x1eb   :  { %1528 = vmatprep.subr.bf16.mxu1 %v2458_v46  ;;  %v2498_v46 = vld [vmem:[#allocation14 + $0x30] ss:$8 sps:$4 sm:$0xff]  }
 0x1ee   :  { %1529 = vmatpush1.bf16.msra.mxu1 %v2456_v47  ;;  %v2503_v47 = vld [vmem:[#allocation14 + $0x44] ss:$8 sps:$4 sm:$0xff]  }
 0x1ef   :  { %1530 = vmatprep.subr.bf16.mxu1 %v2461_v48  ;;  %v2501_v48 = vld [vmem:[#allocation14 + $0x40] ss:$8 sps:$4 sm:$0xff]  }
 0x1f2   :  { %1531 = vmatpush1.bf16.msra.mxu1 %v2459_v49  ;;  %v2506_v49 = vld [vmem:[#allocation14 + $0x54] ss:$8 sps:$4 sm:$0xff]  }
 0x1f3   :  { %1532 = vmatprep.subr.bf16.mxu1 %v2464_v50  ;;  %v2504_v50 = vld [vmem:[#allocation14 + $0x50] ss:$8 sps:$4 sm:$0xff]  }
 0x1f6   :  { %1533 = vmatpush1.bf16.msra.mxu1 %v2462_v51  ;;  %v2509_v51 = vld [vmem:[#allocation14 + $0x64] ss:$8 sps:$4 sm:$0xff]  }
 0x1f7   :  { %1534 = vmatprep.subr.bf16.mxu1 %v2467_v52  ;;  %v2507_v52 = vld [vmem:[#allocation14 + $0x60] ss:$8 sps:$4 sm:$0xff]  }
 0x1fa   :  { %1535 = vmatpush1.bf16.msra.mxu1 %v2465_v53  ;;  %v2512_v53 = vld [vmem:[#allocation14 + $0x74] ss:$8 sps:$4 sm:$0xff]  }
 0x1fb   :  { %1536 = vmatprep.subr.bf16.mxu1 %v2470_v54  ;;  %v2510_v54 = vld [vmem:[#allocation14 + $0x70] ss:$8 sps:$4 sm:$0xff]  }
 0x1fe   :  { %1537 = vmatpush1.bf16.msra.mxu1 %v2468_v55  ;;  %v2515_v55 = vld [vmem:[#allocation14 + $0x84] ss:$8 sps:$4 sm:$0xff]  }
 0x1ff   :  { %1538 = vmatprep.subr.bf16.mxu1 %v2473_v56  ;;  %v2513_v56 = vld [vmem:[#allocation14 + $0x80] ss:$8 sps:$4 sm:$0xff]  }
 0x202   :  { %1539 = vmatpush1.bf16.msra.mxu1 %v2471_v57  ;;  %v2518_v57 = vld [vmem:[#allocation14 + $0x94] ss:$8 sps:$4 sm:$0xff]  }
 0x203   :  { %1540 = vmatprep.subr.bf16.mxu1 %v2476_v58  ;;  %v2516_v58 = vld [vmem:[#allocation14 + $0x90] ss:$8 sps:$4 sm:$0xff]  }
 0x206   :  { %1541 = vmatpush1.bf16.msra.mxu1 %v2474_v59  ;;  %v2521_v59 = vld [vmem:[#allocation14 + $0xa4] ss:$8 sps:$4 sm:$0xff]  }
 0x207   :  { %1542 = vmatprep.subr.bf16.mxu1 %v2479_v60  ;;  %v2519_v60 = vld [vmem:[#allocation14 + $0xa0] ss:$8 sps:$4 sm:$0xff]  }
 0x20a   :  { %1543 = vmatpush1.bf16.msra.mxu1 %v2477_v61  ;;  %v2524_v61 = vld [vmem:[#allocation14 + $0xb4] ss:$8 sps:$4 sm:$0xff]  }
 0x20b   :  { %1544 = vmatprep.subr.bf16.mxu1 %v2482_v62  ;;  %v2522_v62 = vld [vmem:[#allocation14 + $0xb0] ss:$8 sps:$4 sm:$0xff]  }
 0x20e   :  { %1545 = vmatpush1.bf16.msra.mxu1 %v2480_v63  ;;  %v2527_v63 = vld [vmem:[#allocation14 + $0xc4] ss:$8 sps:$4 sm:$0xff]  }
 0x20f   :  { %1546 = vmatprep.subr.bf16.mxu1 %v2485_v1  ;;  %v2525_v1 = vld [vmem:[#allocation14 + $0xc0] ss:$8 sps:$4 sm:$0xff]  }
 0x212   :  { %1547 = vmatpush1.bf16.msra.mxu1 %v2483_v2  ;;  %v2530_v2 = vld [vmem:[#allocation14 + $0xd4] ss:$8 sps:$4 sm:$0xff]  }
 0x213   :  { %1548 = vmatprep.subr.bf16.mxu1 %v2488_v32  ;;  %v2544_v32 = vld [vmem:[#allocation16 + $0x18] sm:$0xff]  }
 0x216   :  { %1549 = vmatpush1.bf16.msra.mxu1 %v2486_v33  ;;  %v2545_v33 = vld [vmem:[#allocation16 + $0x60] sm:$0xff]  }
 0x276   :  { %v792_v6 = vpop.f32.mrb[0].mxu1 }
 0x277   :  { %v793_v7 = vadd.f32 %v792_v6, %v591_v4  ;;  %v794_v8 = vpop.f32.mrb[1].mxu1  ;;  %v835_v4 = vld [vmem:[%s3143_s8] sm:$0x3] }
 0x278   :  { %v795_v39 = vadd.f32 %v794_v8, %v595_v5  ;;  %v796_v9 = vpop.f32.mrb[2].mxu1  ;;  %v840_v5 = vrot.slane %v835_v4, %v3037_v19  ;;  %v844_v6 = vrot.slane %v835_v4, %v3042_v21 }
 0x279   :  { %v799_v10 = vmax.f32 %v793_v7, 0.0  ;;  %v797_v11 = vpop.f32.mrb[3].mxu1 }
 0x27a   :  { %v800_v12 = vmax.f32 %v795_v39, 0.0 }
 0x27b   :  { %v801_v15 = vpack.c.bf16 %v799_v10, %v799_v10 }
 0x27c   :  { %v802_v13 = vpack.c.bf16 %v800_v12, %v800_v12 }
 0x27e   :  { %1039 = vmatprep.mubr.bf16.mxu0 %v802_v13 }
 0x27f   :  { %1040 = vmatmul.mubr.bf16.vlgmr.msra.gmra.mrb[4].mxu0 %v801_v15 }
 0x280   :  { %1284 = vmatpush1.bf16.msra.mxu0 %v2396_v14  ;;  %1315 = vmatprep.mubr.bf16.mxu0 %v2802_v0  ;;  %v2432_v0 = vld [vmem:[#allocation10 + $0x60] ss:$8 sps:$4 sm:$0xff]  }
 0x281   :  { %1285 = vmatprep.subr.bf16.mxu0 %v2404_v16 }
 0x284   :  { %1286 = vmatpush1.bf16.msra.mxu0 %v2402_v17 }
 0x285   :  { %1287 = vmatprep.subr.bf16.mxu0 %v2410_v18 }
 0x288   :  { %1288 = vmatpush1.bf16.msra.mxu0 %v2408_v20 }
 0x289   :  { %1289 = vmatprep.subr.bf16.mxu0 %v2416_v22  ;;  %v2533_v22 = vld [vmem:[#allocation14 + $0xe4] ss:$8 sps:$4 sm:$0xff]  }
 0x28c   :  { %1290 = vmatpush1.bf16.msra.mxu0 %v2414_v23  ;;  %v2531_v23 = vld [vmem:[#allocation14 + $0xe0] ss:$8 sps:$4 sm:$0xff]  }
 0x28d   :  { %1291 = vmatprep.subr.bf16.mxu0 %v2422_v24  ;;  %v2536_v24 = vld [vmem:[#allocation14 + $0xf4] ss:$8 sps:$4 sm:$0xff]  }
 0x290   :  { %1292 = vmatpush1.bf16.msra.mxu0 %v2420_v25  ;;  %v2534_v25 = vld [vmem:[#allocation14 + $0xf0] ss:$8 sps:$4 sm:$0xff]  }
 0x291   :  { %1293 = vmatprep.subr.bf16.mxu0 %v2428_v26  ;;  %v2537_v26 = vld [vmem:[#allocation16 + $0x40] sm:$0xff]  }
 0x292   :  { %2225 = vmatprep.subr.bf16.mxu1 %v2537_v26 }
 0x294   :  { %1294 = vmatpush1.bf16.msra.mxu0 %v2426_v27  ;;  %v2538_v27 = vld [vmem:[#allocation16] sm:$0xff]  }
 0x295   :  { %1295 = vmatprep.subr.bf16.mxu0 %v2434_v28  ;;  %v2539_v28 = vld [vmem:[#allocation16 + $0x48] sm:$0xff]  }
 0x298   :  { %1296 = vmatpush1.bf16.msra.mxu0 %v2432_v0  ;;  %v2540_v0 = vld [vmem:[#allocation16 + $0x8] sm:$0xff]  }
 0x299   :  { %1297 = vmatprep.subr.bf16.mxu0 %v2440_v29  ;;  %v2541_v29 = vld [vmem:[#allocation16 + $0x50] sm:$0xff]  }
 0x29c   :  { %1298 = vmatpush1.bf16.msra.mxu0 %v2438_v30  ;;  %v2542_v30 = vld [vmem:[#allocation16 + $0x10] sm:$0xff]  }
 0x29d   :  { %1783 = vmatprep.subr.bf16.mxu0 %v2491_v37  ;;  %v2547_v37 = vld [vmem:[#allocation16 + $0x68] sm:$0xff]  }
 0x29f   :  { %1316 = vmatmul.mubr.bf16.vlgmr.msra.gmra.mrb[8].mxu0 %v1048_v31  ;;  %v2543_v31 = vld [vmem:[#allocation16 + $0x58] sm:$0xff]  }
 0x2a0   :  { %1784 = vmatpush1.bf16.msra.mxu0 %v2489_v35  ;;  %v2546_v35 = vld [vmem:[#allocation16 + $0x20] sm:$0xff]  }
 0x2a1   :  { %1785 = vmatprep.subr.bf16.mxu0 %v2494_v38  ;;  %v2548_v38 = vld [vmem:[#allocation16 + $0x28] sm:$0xff]  }
 0x2a4   :  { %1786 = vmatpush1.bf16.msra.mxu0 %v2492_v40  ;;  %v1561_v40 = vld [vmem:[%s3147_s12] sm:$0x3] }
 0x2a5   :  { %1787 = vmatprep.subr.bf16.mxu0 %v2497_v42 }
 0x2a8   :  { %1788 = vmatpush1.bf16.msra.mxu0 %v2495_v45 }
 0x2a9   :  { %1789 = vmatprep.subr.bf16.mxu0 %v2500_v36 }
 0x2ac   :  { %v3099_v41 = vpop.f32.mrb[4].mxu1  ;;  %1790 = vmatpush1.bf16.msra.mxu0 %v2498_v46 }
 0x2ad   :  { %v3101_v43 = vpop.f32.mrb[5].mxu1  ;;  %1791 = vmatprep.subr.bf16.mxu0 %v2503_v47 }
 0x2ae   :  { %v1200_v44 = vpop.f32.mrb[6].mxu1 }
 0x2af   :  { %v1201_v34 = vpop.f32.mrb[7].mxu1 }
 0x2b0   :  { %1792 = vmatpush1.bf16.msra.mxu0 %v2501_v48 }
 0x2b1   :  { %1793 = vmatprep.subr.bf16.mxu0 %v2506_v49 }
 0x2b4   :  { %1794 = vmatpush1.bf16.msra.mxu0 %v2504_v50 }
 0x2b5   :  { %1795 = vmatprep.subr.bf16.mxu0 %v2509_v51 }
 0x2b8   :  { %1796 = vmatpush1.bf16.msra.mxu0 %v2507_v52 }
 0x2b9   :  { %1797 = vmatprep.subr.bf16.mxu0 %v2512_v53  ;;  %v2549_v53 = vld [vmem:[#allocation16 + $0x70] sm:$0xff]  }
 0x2bc   :  { %1798 = vmatpush1.bf16.msra.mxu0 %v2510_v54  ;;  %v2550_v54 = vld [vmem:[#allocation16 + $0x30] sm:$0xff]  }
 0x2bd   :  { %1799 = vmatprep.subr.bf16.mxu0 %v2515_v55  ;;  %v2551_v55 = vld [vmem:[#allocation16 + $0x78] sm:$0xff]  }
 0x2c0   :  { %1800 = vmatpush1.bf16.msra.mxu0 %v2513_v56  ;;  %v2552_v56 = vld [vmem:[#allocation16 + $0x38] sm:$0xff]  }
 0x2c1   :  { %1801 = vmatprep.subr.bf16.mxu0 %v2518_v57  ;;  %v1611_v57 = vld [vmem:[%s3149_s14] sm:$0x3]  ;;  %s2809_s14 = smov [#allocation17]  }
 0x2c2   :  { %s2010_s19 = sshll.u32 %s2809_s14, 4  ;;  %s2011_s19 = int_to_ptr.vmem [resolvable:$true] %s2010_s19 }
 0x2c3   :  { %s2755_s26 = scalar_lea.vmem %s2011_s19, 128  ;;  %p2760_p3 = scmp.lt.s32.totalorder %s2011_s19, %s2011_s19 }
 0x2c4   :  { %1802 = vmatpush1.bf16.msra.mxu0 %v2516_v58  ;;  %v1616_v58 = vrot.slane %v1611_v57, %v3037_v19  ;;  %p2756_p2 = scmp.ne.s32.totalorder %s2011_s19, %s2755_s26  ;;  %p2761_p4 = scmp.lt.s32.totalorder %s2755_s26, %s2755_s26 }
 0x2c5   :  { %1803 = vmatprep.subr.bf16.mxu0 %v2521_v59  ;;  %v1620_v59 = vrot.slane %v1611_v57, %v3042_v21 }
 0x2c6   :  { %p2762_p5 = por %p2761_p4, %p2760_p3 }
 0x2c8   :  { %1804 = vmatpush1.bf16.msra.mxu0 %v2519_v60  ;;  %p2763_p6 = pnand %p2762_p5, %p2756_p2 }
 0x2c9   :  { %1805 = vmatprep.subr.bf16.mxu0 %v2524_v61 }
 0x2cc   :  { %1806 = vmatpush1.bf16.msra.mxu0 %v2522_v62 }
 0x2cd   :  { %1807 = vmatprep.subr.bf16.mxu0 %v2527_v63 }
 0x2d0   :  { %1808 = vmatpush1.bf16.msra.mxu0 %v2525_v1 }
 0x2d1   :  { %1809 = vmatprep.subr.bf16.mxu0 %v2530_v2 }
 0x2d4   :  { %1810 = vmatpush1.bf16.msra.mxu0 %v2528_v3 }
 0x2d5   :  { %1811 = vmatprep.subr.bf16.mxu0 %v2533_v22 }
 0x2d8   :  { %1812 = vmatpush1.bf16.msra.mxu0 %v2531_v23 }
 0x2d9   :  { %1813 = vmatprep.subr.bf16.mxu0 %v2536_v24 }
 0x2dc   :  { %1814 = vmatpush1.bf16.msra.mxu0 %v2534_v25 }
 0x352   :  { %v1041_v7 = vpop.f32.mrb[4].mxu0 }
 0x353   :  { %v1042_v8 = vadd.f32 %v1041_v7, %v840_v5  ;;  %v1043_v39 = vpop.f32.mrb[5].mxu0 }
 0x354   :  { %v1044_v9 = vadd.f32 %v1043_v39, %v844_v6  ;;  %v1045_v10 = vpop.f32.mrb[6].mxu0 }
 0x355   :  { %v1046_v11 = vpop.f32.mrb[7].mxu0  ;;  %v1324_v13 = vpack.c.bf16 %v1042_v8, %v1042_v8  ;;  %v2208_v8 = vld [vmem:[%s3151_s16] ss:$0 sm:$0xff] }
 0x356   :  { %v1325_v12 = vpack.c.bf16 %v1044_v9, %v1044_v9 }
 0x358   :  { %1550 = vmatprep.mubr.bf16.mxu1 %v1325_v12 }
 0x359   :  { %1551 = vmatmul.mubr.bf16.vlgmr.msra.gmra.mrb[8].mxu1 %v1324_v13 }
 0x35a   :  { %2226 = vmatpush3.bf16.msra.mxu1 %v2538_v27 }
 0x35b   :  { %2227 = vmatprep.subr.bf16.mxu1 %v2539_v28 }
 0x35e   :  { %2228 = vmatpush3.bf16.msra.mxu1 %v2540_v0 }
 0x35f   :  { %2229 = vmatprep.subr.bf16.mxu1 %v2541_v29 }
 0x362   :  { %2230 = vmatpush3.bf16.msra.mxu1 %v2542_v30 }
 0x363   :  { %2231 = vmatprep.subr.bf16.mxu1 %v2543_v31 }
 0x366   :  { %2232 = vmatpush3.bf16.msra.mxu1 %v2544_v32 }
 0x367   :  { %2233 = vmatprep.subr.bf16.mxu1 %v2545_v33 }
 0x36a   :  { %2234 = vmatpush3.bf16.msra.mxu1 %v2546_v35 }
 0x36b   :  { %2235 = vmatprep.subr.bf16.mxu1 %v2547_v37 }
 0x36e   :  { %2236 = vmatpush3.bf16.msra.mxu1 %v2548_v38 }
 0x36f   :  { %2237 = vmatprep.subr.bf16.mxu1 %v2549_v53 }
 0x372   :  { %v1317_v14 = vpop.f32.mrb[8].mxu0  ;;  %2238 = vmatpush3.bf16.msra.mxu1 %v2550_v54 }
 0x373   :  { %v1318_v15 = vadd.f32 %v1317_v14, %v3099_v41  ;;  %v1319_v16 = vpop.f32.mrb[9].mxu0  ;;  %v1566_v41 = vrot.slane %v1561_v40, %v3037_v19  ;;  %2239 = vmatprep.subr.bf16.mxu1 %v2551_v55 }
 0x374   :  { %v1320_v17 = vadd.f32 %v1319_v16, %v3101_v43  ;;  %v1321_v18 = vpop.f32.mrb[10].mxu0  ;;  %v1570_v43 = vrot.slane %v1561_v40, %v3042_v21 }
 0x375   :  { %v1322_v20 = vpop.f32.mrb[11].mxu0 }
 0x376   :  { %2240 = vmatpush3.bf16.msra.mxu1 %v2552_v56 }
 0x42c   :  { %v1552_v42 = vpop.f32.mrb[8].mxu1 }
 0x42d   :  { %v1559_v44 = vadd.f32 %v1552_v42, %v1318_v15  ;;  %v1554_v34 = vpop.f32.mrb[9].mxu1 }
 0x42e   :  { %v1560_v45 = vadd.f32 %v1554_v34, %v1320_v17  ;;  %v1556_v36 = vpop.f32.mrb[10].mxu1 }
 0x42f   :  { %v1573_v46 = vadd.f32 %v1566_v41, %v1559_v44  ;;  %v1557_v47 = vpop.f32.mrb[11].mxu1 }
 0x430   :  { %v1574_v48 = vadd.f32 %v1570_v43, %v1560_v45 }
 0x431   :  { %v1575_v49 = vmax.f32 %v1573_v46, 0.0 }
 0x432   :  { %v1576_v50 = vmax.f32 %v1574_v48, 0.0 }
 0x433   :  { %v1577_v52 = vpack.c.bf16 %v1575_v49, %v1575_v49 }
 0x434   :  { %v1578_v51 = vpack.c.bf16 %v1576_v50, %v1576_v50 }
 0x436   :  { %1815 = vmatprep.mubr.bf16.mxu0 %v1578_v51 }
 0x437   :  { %1816 = vmatmul.mubr.bf16.vlgmr.msra.gmra.mrb[12].mxu0 %v1577_v52 }
 0x50a   :  { %v1817_v60 = vpop.f32.mrb[12].mxu0 }
 0x50b   :  { %v1818_v61 = vadd.f32 %v1817_v60, %v1616_v58  ;;  %v1819_v62 = vpop.f32.mrb[13].mxu0 }
 0x50c   :  { %v1820_v63 = vadd.f32 %v1819_v62, %v1620_v59  ;;  %v1821_v1 = vpop.f32.mrb[14].mxu0 }
 0x50d   :  { %v1824_v2 = vmax.f32 %v1818_v61, 0.0  ;;  %v1822_v3 = vpop.f32.mrb[15].mxu0 }
 0x50e   :  { %v1825_v4 = vmax.f32 %v1820_v63, 0.0 }
 0x50f   :  { %v1826_v6 = vpack.c.bf16 %v1824_v2, %v1824_v2 }
 0x510   :  { %v1827_v5 = vpack.c.bf16 %v1825_v4, %v1825_v4 }
 0x512   :  { %1995 = vmatprep.mubr.bf16.mxu1 %v1827_v5 }
 0x513   :  { %1996 = vmatmul.mubr.bf16.vlgmr.msra.gmra.mrb[12].mxu1 %v1826_v6 }
 0x5e6   :  { %v2241_v7 = vpop.f32.mrb[12].mxu1 }
 0x5e7   :  { %v2242_v19 = vpop.f32.mrb[13].mxu1 }
 0x5e8   :  { %v2243_v21 = vadd.f32 %v2242_v19, %v2241_v7  ;;  %v2244_v39 = vpop.f32.mrb[14].mxu1 }
 0x5e9   :  { %v2245_v9 = vpop.f32.mrb[15].mxu1 }
 0x5ea   :  { %v1998_v10 = vadd.f32 %v2243_v21, %v2208_v8 }
 0x5ec   :  { %2003 = vst [vmem:[#allocation17] sm:$0xff] %v1998_v10 }
 0x5ed   :  { %2766 = shalt.err (!%p2763_p6)
}
 0x5ee   :  { %s3161_s5 = sld [smem:[#allocation26_spill]] }
 0x5f4   :  { %s2767_s16 = scalar_lea.hbm %s3161_s5, 128 }
 0x5f5   :  { %p2768_p7 = scmp.ne.s32.totalorder %s3161_s5, %s2767_s16  ;;  %p2771_p8 = scmp.lt.u32.totalorder %s2767_s16, %s3161_s5 }
 0x5f7   :  { %p2773_p9 = pnand %p2771_p8, %p2768_p7 }
 0x5f9   :  { %2776 = shalt.err (!%p2773_p9)
}
 0x5fa   :  { %2013 = dma.vmem_to_hbm [thread:$0]  %s2011_s19, 128, %s3161_s5, [#allocation4]  }
 0x5fb   :  { %2787 = dma.done.wait [#allocation4], 128  }
 0x5fc   :  { %2788 = vsyncadd [#allocation4], 4294967168 }
 0x5fd   :  { %2017 = vsyncpa [#allocation3], 1 }
 0x5fe   :  { %2018 = vsyncpa [#allocation6], 1 }
 0x5ff   :  { %2019 = vsyncpa [#allocation9], 1 }
 0x600   :  { %2020 = vsyncpa [#allocation12], 1 }
 0x601   :  { %2021 = vsyncpa [#allocation15], 1 }
 0x602   :  { %2022 = vsyncpa [#allocation4], 1 }

</bundles_post_ra>
